<compile_context>
chip_gen: v5e
topology: v5e:2x2
jax: 0.10.0
libtpu: 0.0.40
codegen_flags: <defaults>
</compile_context>

<pallas_src>
import jax
import jax.numpy as jnp
from jax import lax
from jax.experimental import pallas as pl
from jax.experimental.pallas import tpu as pltpu


# ---------------------------------------------------------------------------
# Kernel 1: 1x1 conv (channel matmul, C_in streamed in chunks) + bias + pos.
# ---------------------------------------------------------------------------
def _conv_pos_kernel(x_ref, w_ref, b_ref, pos_ref, src_ref, srcbf_ref, acc_ref):
    # Block shapes:
    #   x_ref    : (1, TC, HW)        w_ref   : (C_out, TC) bf16
    #   b_ref    : (C_out, 1)  f32    pos_ref : (C_out, HW) f32
    #   src_ref  : (1, C_out, HW) f32 (module output, torch layout)
    #   srcbf_ref: (1, C_out, HW) bf16 (Gram operand for kernel 2)
    #   acc_ref  : (C_out, HW) f32 VMEM scratch, persists across the k axis.
    k = pl.program_id(1)

    @pl.when(k == 0)
    def _():
        acc_ref[...] = jnp.zeros_like(acc_ref)

    # 1x1 conv == channel matmul on the MXU (bf16 operands, f32 accumulate).
    acc_ref[...] += jnp.dot(
        w_ref[...],
        x_ref[0].astype(jnp.bfloat16),
        preferred_element_type=jnp.float32,
    )

    @pl.when(k == pl.num_programs(1) - 1)
    def _():
        s = acc_ref[...] + b_ref[...] + pos_ref[...]      # (C_out, HW) f32
        src_ref[0] = s.astype(src_ref.dtype)
        srcbf_ref[0] = s.astype(srcbf_ref.dtype)


# ---------------------------------------------------------------------------
# Kernel 2: per-batch Gram / self-similarity  A[b, i, j] = sum_c s[c,i]*s[c,j]
# ---------------------------------------------------------------------------
def _gram_kernel(s_ref, am_ref):
    # s_ref : (1, C_out, HW) bf16; index map constant in q -> stays VMEM
    #         resident for the whole batch, fetched once per batch.
    # am_ref: (1, TQ, HW) q-tile of the attention map (lane-dense output).
    tq = am_ref.shape[1]
    q = pl.program_id(1)
    align = 128 if tq % 128 == 0 else (8 if tq % 8 == 0 else 1)
    row0 = pl.multiple_of(q * tq, align)
    s_q = s_ref[0, :, pl.ds(row0, tq)]                    # (C_out, TQ) slice of resident block
    # TN dot: contract channels (dim 0 of both operands). The big (C_out, HW)
    # RHS is used in its native layout; only the small per-tile LHS is handled
    # transposed by the MXU lowering.
    am_ref[0] = lax.dot_general(
        s_q, s_ref[0],
        dimension_numbers=(((0,), (0,)), ((), ())),
        preferred_element_type=jnp.float32,
    ).astype(am_ref.dtype)


# ---------------------------------------------------------------------------
# DETR-style sine positional embedding (input-independent, precomputed in JAX).
# ---------------------------------------------------------------------------
def position_embedding_sine(height, width, num_pos_feats, temperature=10000.0):
    """Returns pos of shape (2 * num_pos_feats, H, W) (all-valid mask, no norm)."""
    y_embed = jnp.broadcast_to(
        jnp.arange(1, height + 1, dtype=jnp.float32)[:, None], (height, width))
    x_embed = jnp.broadcast_to(
        jnp.arange(1, width + 1, dtype=jnp.float32)[None, :], (height, width))
    dim_t = jnp.arange(num_pos_feats, dtype=jnp.float32)
    dim_t = temperature ** (2.0 * jnp.floor(dim_t / 2.0) / num_pos_feats)
    pos_x = x_embed[:, :, None] / dim_t
    pos_y = y_embed[:, :, None] / dim_t
    pos_x = jnp.stack(
        (jnp.sin(pos_x[:, :, 0::2]), jnp.cos(pos_x[:, :, 1::2])), axis=3
    ).reshape(height, width, num_pos_feats)
    pos_y = jnp.stack(
        (jnp.sin(pos_y[:, :, 0::2]), jnp.cos(pos_y[:, :, 1::2])), axis=3
    ).reshape(height, width, num_pos_feats)
    pos = jnp.concatenate((pos_y, pos_x), axis=2)          # (H, W, 2*num_pos_feats)
    return jnp.transpose(pos, (2, 0, 1))                   # (2*num_pos_feats, H, W)


# ---------------------------------------------------------------------------
# Tiling / VMEM helpers.
# ---------------------------------------------------------------------------
def _pick_q_tile(hw):
    # Prefer large, 128-multiple q tiles; else largest multiple-of-8 divisor.
    for cand in (512, 256, 128):
        if hw % cand == 0:
            return cand
    best = None
    for d in range(8, min(512, hw) + 1, 8):
        if hw % d == 0:
            best = d
    return best if best is not None else hw


def _pick_cin_chunk(c_in):
    # Weight block (C_out, tc): last dim must be a 128-multiple or the full C_in.
    for cand in (256, 128, 512):
        if c_in % cand == 0:
            return cand
    return c_in


def _vmem_limit(estimate_bytes):
    # Generous headroom, floored at 16 MiB, capped well under v7x's 64 MiB VMEM.
    return int(min(max(2 * estimate_bytes, 16 * 2 ** 20), 48 * 2 ** 20))


# ---------------------------------------------------------------------------
# Wrapper (the "attention head" of AttentionMap_f.forward).
# ---------------------------------------------------------------------------
def attention_map_f_head(x, conv_w, conv_b, *, am_dtype=jnp.float32,
                         batch_last=True, tq=None):
    """Pallas forward of AttentionMap_f's head.

    Args:
      x:       (B, C_in, H, W) backbone feature map (output of backbone.layer4).
      conv_w:  (C_out, C_in, 1, 1) weight of the 1x1 conv.
      conv_b:  (C_out,) bias of the 1x1 conv.
      am_dtype: dtype of the attention map (bf16 halves the dominant HBM
                writeback if the consumer tolerates it; default f32 = torch).
      batch_last: if True, return attention_map as (HW, HW, B) exactly like the
                PyTorch permute(2,1,0); if False, skip that extra HBM pass and
                return (B, HW, HW).
      tq:      optional override of the q tile size.

    Returns:
      src:           (B, C_out, H*W)
      attention_map: (H*W, H*W, B) if batch_last else (B, H*W, H*W)
    """
    B, C_in, H, W = x.shape
    C_out = conv_w.shape[0]
    HW = H * W
    assert C_out % 2 == 0, "sine positional encoding needs an even channel count"

    # Lane-dense flattening; no wrapper-side dtype inflation of x.
    x_flat = x.reshape(B, C_in, HW)
    w2d = conv_w.reshape(C_out, C_in).astype(jnp.bfloat16)
    bias = conv_b.reshape(C_out, 1).astype(jnp.float32)
    pos = position_embedding_sine(H, W, C_out // 2).reshape(C_out, HW)

    # ---- kernel 1: src = conv1x1(x) + bias + pos --------------------------
    tc = _pick_cin_chunk(C_in)
    xi = x_flat.dtype.itemsize
    vmem1 = (2 * tc * HW * xi           # x chunk (double-buffered)
             + 2 * C_out * tc * 2       # weight chunk (bf16)
             + C_out * 4                # bias
             + 2 * C_out * HW * 4       # pos
             + 2 * C_out * HW * 4       # src f32 output block
             + 2 * C_out * HW * 2       # src bf16 output block
             + C_out * HW * 4)          # accumulator scratch

    src, src_bf16 = pl.pallas_call(
        _conv_pos_kernel,
        grid=(B, C_in // tc),
        in_specs=[
            pl.BlockSpec((1, tc, HW), lambda b, k: (b, k, 0)),   # x chunk
            pl.BlockSpec((C_out, tc), lambda b, k: (0, k)),      # weight chunk
            pl.BlockSpec((C_out, 1), lambda b, k: (0, 0)),       # bias
            pl.BlockSpec((C_out, HW), lambda b, k: (0, 0)),      # positional enc.
        ],
        out_specs=[
            pl.BlockSpec((1, C_out, HW), lambda b, k: (b, 0, 0)),
            pl.BlockSpec((1, C_out, HW), lambda b, k: (b, 0, 0)),
        ],
        out_shape=(
            jax.ShapeDtypeStruct((B, C_out, HW), jnp.float32),
            jax.ShapeDtypeStruct((B, C_out, HW), jnp.bfloat16),
        ),
        scratch_shapes=[pltpu.VMEM((C_out, HW), jnp.float32)],
        compiler_params=pltpu.CompilerParams(
            dimension_semantics=("parallel", "arbitrary"),
            vmem_limit_bytes=_vmem_limit(vmem1)),
    )(x_flat, w2d, bias, pos)

    # ---- kernel 2: A[b] = src[b]^T @ src[b], q-tiled -----------------------
    if tq is None:
        tq = _pick_q_tile(HW)
    assert HW % tq == 0 and (tq % 8 == 0 or tq == HW), f"bad q tile {tq} for HW={HW}"
    vmem2 = 2 * C_out * HW * 2 + 2 * tq * HW * jnp.dtype(am_dtype).itemsize

    am = pl.pallas_call(
        _gram_kernel,
        grid=(B, HW // tq),
        in_specs=[pl.BlockSpec((1, C_out, HW), lambda b, q: (b, 0, 0))],
        out_specs=pl.BlockSpec((1, tq, HW), lambda b, q: (b, q, 0)),
        out_shape=jax.ShapeDtypeStruct((B, HW, HW), am_dtype),
        compiler_params=pltpu.CompilerParams(
            dimension_semantics=("parallel", "parallel"),   # q tiles split across cores even at B=1
            vmem_limit_bytes=_vmem_limit(vmem2)),
    )(src_bf16)

    if batch_last:
        # torch: matmul(a1, a1^T).permute(2, 1, 0) -> (HW, HW, B). Kept only for
        # layout parity; it costs a full extra HBM read+write in XLA, so real
        # consumers should use batch_last=False and take (B, HW, HW).
        am = jnp.transpose(am, (2, 1, 0))
    return src, am


if __name__ == "__main__":
    # Small stand-in shapes (real module: C_in=2048, C_out=256, HW ~ 56*56).
    # tq=128 forces 2 q tiles so the q-tiled grid + dynamic lane slice is
    # exercised; C_in=512 with tc=256 exercises the k-accumulation path.
    B, C_in, C_out, H, W = 2, 512, 256, 16, 16
    key = jax.random.PRNGKey(0)
    kx, kw, kb = jax.random.split(key, 3)
    x = jax.random.normal(kx, (B, C_in, H, W), dtype=jnp.float32)
    conv_w = 0.02 * jax.random.normal(kw, (C_out, C_in, 1, 1), dtype=jnp.float32)
    conv_b = 0.02 * jax.random.normal(kb, (C_out,), dtype=jnp.float32)

    src, attention_map = jax.block_until_ready(
        attention_map_f_head(x, conv_w, conv_b, tq=128))

    HW = H * W
    assert src.shape == (B, C_out, HW)
    assert attention_map.shape == (HW, HW, B)

    # Plain-JAX f32 reference (kernel uses bf16 MXU operands, f32 accumulation).
    pos = position_embedding_sine(H, W, C_out // 2).reshape(C_out, HW)
    h = jnp.einsum('oc,bcp->bop', conv_w.reshape(C_out, C_in),
                   x.reshape(B, C_in, HW)) + conv_b[None, :, None]
    src_expected = h + pos[None]
    a1 = jnp.transpose(src_expected, (0, 2, 1))                       # (B, HW, C_out)
    am_expected = jnp.transpose(jnp.einsum('bqc,bkc->bqk', a1, a1), (2, 1, 0))
    assert jnp.allclose(src, src_expected, rtol=5e-2, atol=1e-1), "src mismatch"
    assert jnp.allclose(attention_map, am_expected, rtol=5e-2, atol=2.0), \
        "attention_map mismatch"

    print("KERNEL_OK")
</pallas_src>

<mosaic_0001>
module attributes {stable_mosaic.version = 11 : i64} {
  func.func @_conv_pos_kernel(%arg0: i32, %arg1: i32, %arg2: memref<1x256x256xf32, #tpu.memory_space<vmem>>, %arg3: memref<256x256xbf16, #tpu.memory_space<vmem>>, %arg4: memref<256x1xf32, #tpu.memory_space<vmem>>, %arg5: memref<256x256xf32, #tpu.memory_space<vmem>>, %arg6: memref<1x256x256xf32, #tpu.memory_space<vmem>>, %arg7: memref<1x256x256xbf16, #tpu.memory_space<vmem>>, %arg8: memref<256x256xf32, #tpu.memory_space<vmem>>) attributes {dimension_semantics = [#tpu.dimension_semantics<parallel>, #tpu.dimension_semantics<arbitrary>], iteration_bounds = array<i64: 2, 2>, scalar_prefetch = 0 : i64, scratch_operands = 1 : i64, tpu.core_type = #tpu.core_type<tc>, window_params = [{transform_indices = @transform_0, window_bounds = array<i64: 1, 256, 256>}, {transform_indices = @transform_1, window_bounds = array<i64: 256, 256>}, {pipeline_mode = #tpu.pipeline_mode<synchronous>, transform_indices = @transform_2, window_bounds = array<i64: 256, 1>}, {pipeline_mode = #tpu.pipeline_mode<synchronous>, transform_indices = @transform_3, window_bounds = array<i64: 256, 256>}, {transform_indices = @transform_4, window_bounds = array<i64: 1, 256, 256>}, {transform_indices = @transform_5, window_bounds = array<i64: 1, 256, 256>}]} {
    %c0_i32 = arith.constant 0 : i32
    %0 = arith.cmpi eq, %arg1, %c0_i32 : i32
    %1 = arith.extui %0 : i1 to i32
    %c0_i32_0 = arith.constant 0 : i32
    %2 = arith.cmpi ne, %1, %c0_i32_0 : i32
    scf.if %2 {
      %cst_10 = arith.constant 0.000000e+00 : f32
      %14 = vector.broadcast %cst_10 : f32 to vector<256x256xf32>
      %c0_11 = arith.constant 0 : index
      %c0_12 = arith.constant 0 : index
      %15 = vector.load %arg8[%c0_11, %c0_12] : memref<256x256xf32, #tpu.memory_space<vmem>>, vector<256x256xf32>
      tpu.vector_store %arg8[%c0_11, %c0_12], %14 {strides = array<i32>} : memref<256x256xf32, #tpu.memory_space<vmem>>, vector<256x256xf32>,
    } else {
    }
    %c0 = arith.constant 0 : index
    %c0_1 = arith.constant 0 : index
    %3 = vector.load %arg8[%c0, %c0_1] : memref<256x256xf32, #tpu.memory_space<vmem>>, vector<256x256xf32>
    %c0_2 = arith.constant 0 : index
    %c0_3 = arith.constant 0 : index
    %4 = vector.load %arg3[%c0_2, %c0_3] : memref<256x256xbf16, #tpu.memory_space<vmem>>, vector<256x256xbf16>
    %c0_4 = arith.constant 0 : index
    %c0_5 = arith.constant 0 : index
    %c0_6 = arith.constant 0 : index
    %5 = vector.load %arg2[%c0_4, %c0_5, %c0_6] : memref<1x256x256xf32, #tpu.memory_space<vmem>>, vector<1x256x256xf32>
    %6 = vector.shape_cast %5 : vector<1x256x256xf32> to vector<256x256xf32>
    %7 = arith.truncf %6 : vector<256x256xf32> to vector<256x256xbf16>
    %cst = arith.constant dense<0.000000e+00> : vector<256x256xf32>
    %8 = tpu.matmul %4, %7, %cst {dimension_numbers = #tpu.dot_dimension_numbers<[1], [0], [0], [1], [0, 0, 1, 1], [], []>} : vector<256x256xbf16>, vector<256x256xbf16>, vector<256x256xf32> -> vector<256x256xf32>
    %9 = arith.addf %3, %8 : vector<256x256xf32>
    %c0_7 = arith.constant 0 : index
    %c0_8 = arith.constant 0 : index
    %10 = vector.load %arg8[%c0_7, %c0_8] : memref<256x256xf32, #tpu.memory_space<vmem>>, vector<256x256xf32>
    tpu.vector_store %arg8[%c0_7, %c0_8], %9 {strides = array<i32>} : memref<256x256xf32, #tpu.memory_space<vmem>>, vector<256x256xf32>,
    %c1_i32 = arith.constant 1 : i32
    %11 = arith.cmpi eq, %arg1, %c1_i32 : i32
    %12 = arith.extui %11 : i1 to i32
    %c0_i32_9 = arith.constant 0 : i32
    %13 = arith.cmpi ne, %12, %c0_i32_9 : i32
    scf.if %13 {
      %c0_10 = arith.constant 0 : index
      %c0_11 = arith.constant 0 : index
      %14 = vector.load %arg8[%c0_10, %c0_11] : memref<256x256xf32, #tpu.memory_space<vmem>>, vector<256x256xf32>
      %c0_12 = arith.constant 0 : index
      %c0_13 = arith.constant 0 : index
      %15 = vector.load %arg4[%c0_12, %c0_13] : memref<256x1xf32, #tpu.memory_space<vmem>>, vector<256x1xf32>
      %16 = vector.broadcast %15 : vector<256x1xf32> to vector<256x256xf32>
      %17 = arith.addf %14, %16 : vector<256x256xf32>
      %c0_14 = arith.constant 0 : index
      %c0_15 = arith.constant 0 : index
      %18 = vector.load %arg5[%c0_14, %c0_15] : memref<256x256xf32, #tpu.memory_space<vmem>>, vector<256x256xf32>
      %19 = arith.addf %17, %18 : vector<256x256xf32>
      %c0_16 = arith.constant 0 : index
      %c0_17 = arith.constant 0 : index
      %c0_18 = arith.constant 0 : index
      %20 = vector.load %arg6[%c0_16, %c0_17, %c0_18] : memref<1x256x256xf32, #tpu.memory_space<vmem>>, vector<1x256x256xf32>
      %21 = vector.shape_cast %20 : vector<1x256x256xf32> to vector<256x256xf32>
      %22 = vector.shape_cast %19 : vector<256x256xf32> to vector<1x256x256xf32>
      tpu.vector_store %arg6[%c0_16, %c0_17, %c0_18], %22 {strides = array<i32>} : memref<1x256x256xf32, #tpu.memory_space<vmem>>, vector<1x256x256xf32>,
      %23 = arith.truncf %19 : vector<256x256xf32> to vector<256x256xbf16>
      %c0_19 = arith.constant 0 : index
      %c0_20 = arith.constant 0 : index
      %c0_21 = arith.constant 0 : index
      %24 = vector.load %arg7[%c0_19, %c0_20, %c0_21] : memref<1x256x256xbf16, #tpu.memory_space<vmem>>, vector<1x256x256xbf16>
      %25 = vector.shape_cast %24 : vector<1x256x256xbf16> to vector<256x256xbf16>
      %26 = vector.shape_cast %23 : vector<256x256xbf16> to vector<1x256x256xbf16>
      tpu.vector_store %arg7[%c0_19, %c0_20, %c0_21], %26 {strides = array<i32>} : memref<1x256x256xbf16, #tpu.memory_space<vmem>>, vector<1x256x256xbf16>,
    } else {
    }
    return
  }
  func.func @transform_0(%arg0: i32, %arg1: i32) -> (i32, i32, i32) {
    %c0_i32 = arith.constant 0 : i32
    %c0_i32_0 = arith.constant 0 : i32
    return %arg0, %arg1, %c0_i32 : i32, i32, i32
  }
  func.func @transform_1(%arg0: i32, %arg1: i32) -> (i32, i32) {
    %c0_i32 = arith.constant 0 : i32
    %c0_i32_0 = arith.constant 0 : i32
    return %c0_i32, %arg1 : i32, i32
  }
  func.func @transform_2(%arg0: i32, %arg1: i32) -> (i32, i32) {
    %c0_i32 = arith.constant 0 : i32
    %c0_i32_0 = arith.constant 0 : i32
    %c0_i32_1 = arith.constant 0 : i32
    return %c0_i32, %c0_i32_0 : i32, i32
  }
  func.func @transform_3(%arg0: i32, %arg1: i32) -> (i32, i32) {
    %c0_i32 = arith.constant 0 : i32
    %c0_i32_0 = arith.constant 0 : i32
    %c0_i32_1 = arith.constant 0 : i32
    return %c0_i32, %c0_i32_0 : i32, i32
  }
  func.func @transform_4(%arg0: i32, %arg1: i32) -> (i32, i32, i32) {
    %c0_i32 = arith.constant 0 : i32
    %c0_i32_0 = arith.constant 0 : i32
    %c0_i32_1 = arith.constant 0 : i32
    return %arg0, %c0_i32, %c0_i32_0 : i32, i32, i32
  }
  func.func @transform_5(%arg0: i32, %arg1: i32) -> (i32, i32, i32) {
    %c0_i32 = arith.constant 0 : i32
    %c0_i32_0 = arith.constant 0 : i32
    %c0_i32_1 = arith.constant 0 : i32
    return %arg0, %c0_i32, %c0_i32_0 : i32, i32, i32
  }
}

</mosaic_0001>

<bundles_post_ra>
// kernel: tpu_custom_call.1
= control target key start
LH: loop header
LB: loop body
LE: loop exit
PB: predicated region body
PF: predicated region fallthrough
CT: control target
= control target key end

     0   :  { %s3361_s0 = inlined_call_operand.hbm [shape: f32[2,512,256], index: 0, kind: input, shape index: {}]   ;;  %s3362_s1 = inlined_call_operand.hbm [shape: bf16[256,512], index: 1, kind: input, shape index: {}]   ;;  %s3363_s2 = inlined_call_operand.vmem [shape: f32[256,1], index: 2, kind: input, shape index: {}]   ;;  %s3364_s3 = inlined_call_operand.hbm [shape: f32[256,256], index: 3, kind: input, shape index: {}]   ;;  %s3365_s4 = inlined_call_operand.hbm [shape: f32[2,256,256], index: 4, kind: output, shape index: {0}]   ;;  %s3366_s5 = inlined_call_operand.hbm [shape: bf16[2,256,256], index: 5, kind: output, shape index: {1}]  }
   0x1   :  { %3382 = sst [smem:[#allocation28_spill]] %s3361_s0 }
   0x2   :  { %3383 = sst [smem:[#allocation29_spill]] %s3364_s3 }
   0x3   :  { %3384 = sst [smem:[#allocation30_spill]] %s3365_s4 }
   0x4   :  { %3385 = sst [smem:[#allocation31_spill]] %s3366_s5 }
   0x5   :  { %11 = vsyncpa [#allocation4], 0 }
   0x6   :  { %13 = vsyncpa [#allocation4 + $0x1], 0 }
   0x7   :  { %14 = vsyncpa [#allocation7], 0 }
   0x8   :  { %16 = vsyncpa [#allocation7 + $0x1], 0 }
   0x9   :  { %17 = vsyncpa [#allocation5], 0 }
   0xa   :  { %19 = vsyncpa [#allocation5 + $0x1], 0 }
   0xb   :  { %20 = vsyncpa [#allocation11], 0 }
   0xc   :  { %22 = vsyncpa [#allocation11 + $0x1], 0  ;;  %s2679_s18 = smov 0   ;;  %s2681_s19 = smov 0  }
   0xd   :  { %s2683_s20 = smov 0   ;;  %s2685_s21 = smov 0  }
   0xe   :  { %s2687_s22 = smov 0   ;;  %s2689_s23 = smov 0  }
   0xf   :  { %s2691_s24 = smov 0   ;;  %s2693_s25 = smov 0  }
  0x10   :  { %s2695_s26 = smov 0   ;;  %s2697_s27 = smov 0  }
  0x11   :  { %s2699_s28 = smov 0   ;;  %s2701_s29 = smov 0  }
  0x12   :  { %s2703_s30 = smov 0   ;;  %s2705_s6 = smov 0  }
  0x13 LB: > { %3386 = sst [smem:[#allocation17_spill]] %s2584_s18  ;;  %s2748_s7 = sadd.s32 4294967295, %s2636_s6   ;;  %s2636_s6 = sphi %s2705_s6, %s28_s6   ;;  %s2632_s30 = sphi %s2703_s30, %s3420_s30   ;;  %s2628_s29 = sphi %s2701_s29, %s3431_s29   ;;  %s2624_s28 = sphi %s2699_s28, %s3430_s28   ;;  %s2620_s27 = sphi %s2697_s27, %s3429_s27   ;;  %s2616_s26 = sphi %s2695_s26, %s3417_s26   ;;  %s2612_s25 = sphi %s2693_s25, %s3428_s25   ;;  %s2608_s24 = sphi %s2691_s24, %s3427_s24   ;;  %s2604_s23 = sphi %s2689_s23, %s3426_s23   ;;  %s2600_s22 = sphi %s2687_s22, %s3425_s22   ;;  %s2596_s21 = sphi %s2685_s21, %s3424_s21   ;;  %s2592_s20 = sphi %s2683_s20, %s3415_s20   ;;  %s2588_s19 = sphi %s2681_s19, %s3423_s19   ;;  %s2584_s18 = sphi %s2679_s18, %s3422_s18  }
  0x14   : > { %3387 = sst [smem:[#allocation18_spill]] %s2592_s20  ;;  %s2008_s8 = sadd.s32 4294967294, %s2636_s6  }
  0x15   : > { %3388 = sst [smem:[#allocation19_spill]] %s2616_s26  ;;  %p63_p0 = scmp.eq.s32.totalorder %s2748_s7, 0 }
  0x16   : > { %3389 = sst [smem:[#allocation20_spill]] %s2624_s28  ;;  %p88_p1 = scmp.ne.s32.totalorder %s2600_s22, %s2596_s21 }
  0x17   : > { %3390 = sst [smem:[#allocation21_spill]] %s2632_s30  ;;  %p153_p2 = scmp.ne.s32.totalorder %s2592_s20, %s2588_s19 }
  0x18   : > { %p154_p3 = scmp.eq.s32.totalorder %s2748_s7, 3  ;;  %p2758_p4 = por %p88_p1, %p63_p0 }
  0x19   : > { %p159_p5 = scmp.ne.s32.totalorder %s2588_s19, %s2584_s18  ;;  %p160_p7 = scmp.eq.s32.totalorder %s2008_s8, 3 }
  0x1a   : > { %p2764_p6 = por %p154_p3, %p153_p2  ;;  %p2009_p8 = scmp.ge.s32.totalorder %s2636_s6, 1 }
  0x1b   : > { %p193_p9 = scmp.lt.s32.totalorder %s2636_s6, 5  ;;  %p2770_p10 = por %p160_p7, %p159_p5 }
  0x1c   : > { %s3392_s10 = scalar_select %p2764_p6, 1, 0 }
  0x1d   : > { %s3394_s11 = scalar_select %p2770_p10, 1, 0 }
  0x1e   : > { %3393 = sst [smem:[#allocation22_spill]] %s3392_s10  ;;  %p2774_p11 = pnand %p2009_p8, %p193_p9 }
  0x1f   : > { %3395 = sst [smem:[#allocation23_spill]] %s3394_s11  ;;  %s2638_s16 = smov [#allocation8]  }
  0x20   : > { %s3397_s3 = sld [smem:[#allocation29_spill]]  ;;  %p2212_p12 = pneg %p2774_p11 }
  0x21   : > { %s209_s17 = sshll.u32 %s2638_s16, 4  ;;  %s3367_s21 = smov 256   ;;  %s210_s17 = int_to_ptr.vmem [resolvable:$true] %s209_s17 }
  0x22   : > { %p2213_p13 = pnand %p2212_p12, %p63_p0  ;;  %s3369_s8 = smov 16  }
  0x23   : > { %s37_s13 = sadd.s32 1, %s2628_s29  ;;  %s40_s14 = sadd.s32 1, %s2632_s30 }
  0x24   : > { %p38_p1 = scmp.ge.s32.totalorder %s37_s13, 2  ;;  %s49_s16 = sadd.s32 1, %s2616_s26 }
  0x25   : > { %p56_p2 = scmp.ne.s32.totalorder %s2616_s26, %s2612_s25  ;;  %p57_p3 = scmp.eq.s32.totalorder %s2636_s6, 0 }
  0x26   : > { %s207_s15 = sshll.u32 %s3397_s3, 4  ;;  %s3433_s13 = smov (%p38_p1, %s37_s13), 0  ;;  %s208_s15 = int_to_ptr.hbm [resolvable:$true] %s207_s15 }
  0x27   : > { %2215 = dma.hbm_to_vmem [thread:$0]  (!%p2213_p13), %s208_s15, 8192, %s210_s17, [#allocation7], %s3367_s21, %s3367_s21, %s3369_s8  }
  0x28   : > { %3398 = sst [smem:[#allocation24_spill]] %s3433_s13  ;;  %s3435_s14 = smov (!%p38_p1, %s40_s14), %s2632_s30 }
  0x29   : > { %s2799_s3 = ssub.s32 %s2628_s29, %s3433_s13  ;;  %p2803_p5 = por %p57_p3, %p56_p2 }
  0x2a   : > { %p42_p7 = scmp.ge.s32.totalorder %s3435_s14, 2  ;;  %p62_p8 = scmp.ne.s32.totalorder %s2612_s25, %s2608_s24 }
  0x2b   : > { %p73_p9 = scmp.eq.s32.totalorder %s2799_s3, 0  ;;  %s143_s17 = sadd.s32 1, %s2592_s20 }
  0x2c   : > { %s3437_s14 = smov (%p42_p7, %s3435_s14), 0  ;;  %p2815_p12 = por %p63_p0, %p62_p8 }
  0x2d   : > { %3400 = sst [smem:[#allocation25_spill]] %s3437_s14  ;;  %p2231_p13 = scmp.lt.s32.totalorder %s2636_s6, 4 }
  0x2e   : > { %s44_s8 = ssub.s32 %s2632_s30, %s3437_s14  ;;  %s223_s13 = sand.u32 1, %s2616_s26  }
  0x2f   : > { %s46_s11 = sor.u32 %s2799_s3, %s44_s8  ;;  %p141_p1 = scmp.eq.s32.totalorder %s44_s8, 0 }
  0x30   : > { %p47_p2 = scmp.eq.s32.totalorder %s46_s11, 0  ;;  %s2012_s5 = sshll.u32 %s223_s13, 9 }
  0x31   : > { %s2825_s18 = scalar_select %p141_p1, %s2592_s20, %s143_s17  }
  0x32   : > { %s2828_s24 = scalar_select %p47_p2, %s2616_s26, %s49_s16  }
  0x33   : > { %3402 = sst [smem:[#allocation26_spill]] %s2825_s18  ;;  %s2164_s4 = sshll.u32 %s2628_s29, 6 }
  0x34   : > { %3403 = sst [smem:[#allocation27_spill]] %s2828_s24  ;;  %s2015_s10 = sshll.u32 %s2632_s30, 7 }
  0x35   : > { %s233_s14 = sadd.s32 %s2164_s4, %s2015_s10  ;;  %s227_s28 = scalar_lea.vmem [#allocation3], %s2012_s5 }
  0x36   : > { %s238_s8 = sshll.u32 %s227_s28, 4  ;;  %s2016_s11 = sshll.u32 %s233_s14, 3  ;;  %s239_s8 = int_to_ptr.vmem [resolvable:$true] %s238_s8 }
  0x37   : > { %s3404_s0 = sld [smem:[#allocation28_spill]]  ;;  %p2217_p7 = pnand %p2231_p13, %p2803_p5 }
  0x38   : > { %s224_s26 = scalar_lea.sflag [#allocation4], %s223_s13  ;;  %s3405_s20 = smov 16  }
  0x39   : > { %s3406_s30 = smov 256   ;;  %s248_s4 = sand.u32 1, %s2636_s6  }
  0x3a   : > { %s75_s5 = sadd.s32 1, %s2604_s23  ;;  %p82_p8 = scmp.ne.s32.totalorder %s2604_s23, %s2600_s22 }
  0x3b   : > { %s2849_s28 = scalar_select %p73_p9, %s2604_s23, %s75_s5  }
  0x3c   : > { %p84_p1 = por %p82_p8, %p57_p3  ;;  %s250_s18 = sand.u32 1, %s2604_s23  }
  0x3d   : > { %s235_s16 = scalar_lea.hbm %s3404_s0, %s2016_s11  ;;  %s2165_s10 = sshll.u32 %s2628_s29, 3 }
  0x3e   : > { %s236_s24 = sshll.u32 %s235_s16, 4  ;;  %s2017_s14 = sshll.u32 %s250_s18, 8  ;;  %s237_s24 = int_to_ptr.hbm [resolvable:$true] %s236_s24 }
  0x3f   : > { %2219 = dma.hbm_to_vmem [thread:$0]  (!%p2217_p7), %s237_s24, 8192, %s239_s8, %s224_s26, %s3406_s30, %s3406_s30, %s3405_s20  }
  0x40   : > { %s257_s13 = scalar_lea.hbm %s3362_s1, %s2165_s10  ;;  %s252_s16 = scalar_lea.vmem [#allocation6], %s2017_s14 }
  0x41   : > { %s258_s17 = sshll.u32 %s257_s13, 4  ;;  %s260_s0 = sshll.u32 %s252_s16, 4  ;;  %s259_s17 = int_to_ptr.hbm [resolvable:$true] %s258_s17  ;;  %s261_s0 = int_to_ptr.vmem [resolvable:$true] %s260_s0 }
  0x42   : > { %p2220_p5 = pnand %p2231_p13, %p84_p1  ;;  %s249_s20 = scalar_lea.sflag [#allocation7], %s248_s4 }
  0x43   : > { %s2641_s3 = smov 128   ;;  %s2642_s26 = smov 8  }
  0x44   : > { %2222 = dma.hbm_to_vmem [thread:$0]  (!%p2220_p5), %s259_s17, 4096, %s261_s0, %s249_s20, %s3406_s30, %s2641_s3, %s2642_s26  }
  0x45   : > { %272 = sbr.rel (%p2774_p11) target bundleno = 827 (0x33b), region = 36  ;;  %s274_s24 = sand.u32 (!%p2774_p11), 1, %s2612_s25  }
  0x46   : > { %s2021_s8 = sshll.u32 (!%p2774_p11), %s274_s24, 9  ;;  %s275_s5 = scalar_lea.sflag (!%p2774_p11), [#allocation4], %s274_s24 }
  0x47   : > { %s2864_s18 = scalar_lea.vmem (!%p2774_p11), [#allocation3], %s2021_s8 }
  0x4a   : > { %2563 = dma.done.wait (%p2815_p12), %s275_s5, 8192  }
  0x4b   : > { %2565 = vsyncadd (%p2815_p12), %s275_s5, 4294959104  ;;  %s284_s4 = sand.u32 1, %s2748_s7   ;;  %s286_s0 = sand.u32 1, %s2600_s22  }
  0x4c   : > { %s2022_s30 = sshll.u32 %s286_s0, 8  ;;  %s285_s12 = scalar_lea.sflag [#allocation7], %s284_s4 }
  0x4d   : > { %s2872_s10 = scalar_lea.vmem [#allocation6], %s2022_s30 }
  0x4e   : > { %2567 = dma.done.wait (%p2758_p4), %s285_s12, 4096  }
  0x4f   : > { %2569 = vsyncadd (%p2758_p4), %s285_s12, 4294963200 }
  0x50   : > { %2571 = dma.done.wait (%p63_p0), [#allocation7], 8192  }
  0x51   : > { %2573 = vsyncadd (%p63_p0), [#allocation7], 4294959104  ;;  %s2883_s21 = sand.u32 1, %s2588_s19   ;;  %p2026_p11 = scmp.ne.s32.totalorder %s2620_s27, 0 }
  0x52   : > { %s2024_s14 = sshll.u32 %s2883_s21, 9  ;;  %s2025_s15 = sshll.u32 %s2883_s21, 8 }
  0x53   : > { %s2887_s11 = scalar_lea.vmem [#allocation9], %s2024_s14  ;;  %s2889_s13 = scalar_lea.vmem [#allocation10], %s2025_s15 }
  0x54   : > { %336 = sbr.rel (%p2026_p11) target bundleno = 154 (0x9a), region = 52 }
  0x59   : > { %v2643_v0 = vmov 0.0  }
  0x5a   : > { %337 = vst [vmem:[#allocation2 + $0xb0] sm:$0xff] %v2643_v0 }
  0x5b   : > { %338 = vst [vmem:[#allocation2 + $0x1b0] sm:$0xff] %v2643_v0 }
  0x5c   : > { %339 = vst [vmem:[#allocation2 + $0xd8] sm:$0xff] %v2643_v0 }
  0x5d   : > { %340 = vst [vmem:[#allocation2 + $0x18] sm:$0xff] %v2643_v0 }
  0x5e   : > { %341 = vst [vmem:[#allocation2 + $0x50] sm:$0xff] %v2643_v0 }
  0x5f   : > { %342 = vst [vmem:[#allocation2 + $0x168] sm:$0xff] %v2643_v0 }
  0x60   : > { %343 = vst [vmem:[#allocation2 + $0x130] sm:$0xff] %v2643_v0 }
  0x61   : > { %344 = vst [vmem:[#allocation2 + $0x48] sm:$0xff] %v2643_v0 }
  0x62   : > { %345 = vst [vmem:[#allocation2 + $0x180] sm:$0xff] %v2643_v0 }
  0x63   : > { %346 = vst [vmem:[#allocation2 + $0x110] sm:$0xff] %v2643_v0 }
  0x64   : > { %347 = vst [vmem:[#allocation2 + $0x118] sm:$0xff] %v2643_v0 }
  0x65   : > { %348 = vst [vmem:[#allocation2 + $0x98] sm:$0xff] %v2643_v0 }
  0x66   : > { %349 = vst [vmem:[#allocation2 + $0x120] sm:$0xff] %v2643_v0 }
  0x67   : > { %350 = vst [vmem:[#allocation2 + $0x150] sm:$0xff] %v2643_v0 }
  0x68   : > { %351 = vst [vmem:[#allocation2 + $0x108] sm:$0xff] %v2643_v0 }
  0x69   : > { %352 = vst [vmem:[#allocation2 + $0x60] sm:$0xff] %v2643_v0 }
  0x6a   : > { %353 = vst [vmem:[#allocation2 + $0xe0] sm:$0xff] %v2643_v0 }
  0x6b   : > { %354 = vst [vmem:[#allocation2 + $0x188] sm:$0xff] %v2643_v0 }
  0x6c   : > { %355 = vst [vmem:[#allocation2 + $0x138] sm:$0xff] %v2643_v0 }
  0x6d   : > { %356 = vst [vmem:[#allocation2 + $0x140] sm:$0xff] %v2643_v0 }
  0x6e   : > { %357 = vst [vmem:[#allocation2 + $0x80] sm:$0xff] %v2643_v0 }
  0x6f   : > { %358 = vst [vmem:[#allocation2 + $0x1a8] sm:$0xff] %v2643_v0 }
  0x70   : > { %359 = vst [vmem:[#allocation2 + $0x1b8] sm:$0xff] %v2643_v0 }
  0x71   : > { %360 = vst [vmem:[#allocation2 + $0x28] sm:$0xff] %v2643_v0 }
  0x72   : > { %361 = vst [vmem:[#allocation2 + $0x1e8] sm:$0xff] %v2643_v0 }
  0x73   : > { %362 = vst [vmem:[#allocation2 + $0xf8] sm:$0xff] %v2643_v0 }
  0x74   : > { %363 = vst [vmem:[#allocation2 + $0x160] sm:$0xff] %v2643_v0 }
  0x75   : > { %364 = vst [vmem:[#allocation2 + $0x30] sm:$0xff] %v2643_v0 }
  0x76   : > { %365 = vst [vmem:[#allocation2 + $0x1e0] sm:$0xff] %v2643_v0 }
  0x77   : > { %366 = vst [vmem:[#allocation2] sm:$0xff] %v2643_v0 }
  0x78   : > { %367 = vst [vmem:[#allocation2 + $0xf0] sm:$0xff] %v2643_v0 }
  0x79   : > { %368 = vst [vmem:[#allocation2 + $0x8] sm:$0xff] %v2643_v0 }
  0x7a   : > { %369 = vst [vmem:[#allocation2 + $0x148] sm:$0xff] %v2643_v0 }
  0x7b   : > { %370 = vst [vmem:[#allocation2 + $0x1d0] sm:$0xff] %v2643_v0 }
  0x7c   : > { %371 = vst [vmem:[#allocation2 + $0x100] sm:$0xff] %v2643_v0 }
  0x7d   : > { %372 = vst [vmem:[#allocation2 + $0xc8] sm:$0xff] %v2643_v0 }
  0x7e   : > { %373 = vst [vmem:[#allocation2 + $0x40] sm:$0xff] %v2643_v0 }
  0x7f   : > { %374 = vst [vmem:[#allocation2 + $0x1f8] sm:$0xff] %v2643_v0 }
  0x80   : > { %375 = vst [vmem:[#allocation2 + $0x20] sm:$0xff] %v2643_v0 }
  0x81   : > { %376 = vst [vmem:[#allocation2 + $0x128] sm:$0xff] %v2643_v0 }
  0x82   : > { %377 = vst [vmem:[#allocation2 + $0x1a0] sm:$0xff] %v2643_v0 }
  0x83   : > { %378 = vst [vmem:[#allocation2 + $0x1f0] sm:$0xff] %v2643_v0 }
  0x84   : > { %379 = vst [vmem:[#allocation2 + $0xe8] sm:$0xff] %v2643_v0 }
  0x85   : > { %380 = vst [vmem:[#allocation2 + $0x78] sm:$0xff] %v2643_v0 }
  0x86   : > { %381 = vst [vmem:[#allocation2 + $0x70] sm:$0xff] %v2643_v0 }
  0x87   : > { %382 = vst [vmem:[#allocation2 + $0x90] sm:$0xff] %v2643_v0 }
  0x88   : > { %383 = vst [vmem:[#allocation2 + $0x1d8] sm:$0xff] %v2643_v0 }
  0x89   : > { %384 = vst [vmem:[#allocation2 + $0xd0] sm:$0xff] %v2643_v0 }
  0x8a   : > { %385 = vst [vmem:[#allocation2 + $0xb8] sm:$0xff] %v2643_v0 }
  0x8b   : > { %386 = vst [vmem:[#allocation2 + $0x88] sm:$0xff] %v2643_v0 }
  0x8c   : > { %387 = vst [vmem:[#allocation2 + $0xa8] sm:$0xff] %v2643_v0 }
  0x8d   : > { %388 = vst [vmem:[#allocation2 + $0x1c8] sm:$0xff] %v2643_v0 }
  0x8e   : > { %389 = vst [vmem:[#allocation2 + $0x170] sm:$0xff] %v2643_v0 }
  0x8f   : > { %390 = vst [vmem:[#allocation2 + $0x178] sm:$0xff] %v2643_v0 }
  0x90   : > { %391 = vst [vmem:[#allocation2 + $0x68] sm:$0xff] %v2643_v0 }
  0x91   : > { %392 = vst [vmem:[#allocation2 + $0x190] sm:$0xff] %v2643_v0 }
  0x92   : > { %393 = vst [vmem:[#allocation2 + $0x198] sm:$0xff] %v2643_v0 }
  0x93   : > { %394 = vst [vmem:[#allocation2 + $0x38] sm:$0xff] %v2643_v0 }
  0x94   : > { %395 = vst [vmem:[#allocation2 + $0xc0] sm:$0xff] %v2643_v0 }
  0x95   : > { %396 = vst [vmem:[#allocation2 + $0x1c0] sm:$0xff] %v2643_v0 }
  0x96   : > { %397 = vst [vmem:[#allocation2 + $0x158] sm:$0xff] %v2643_v0 }
  0x97   : > { %398 = vst [vmem:[#allocation2 + $0x10] sm:$0xff] %v2643_v0 }
  0x98   : > { %399 = vst [vmem:[#allocation2 + $0x58] sm:$0xff] %v2643_v0 }
  0x99   : > { %400 = vst [vmem:[#allocation2 + $0xa0] sm:$0xff] %v2643_v0 }
  0x9a PF: > { %v525_v1 = vld [vmem:[%s2864_s18 + $0xe0] sm:$0xff]  ;;  %v527_v2 = vld [vmem:[%s2864_s18 + $0xf0] sm:$0xff]  ;;  %v526_v6 = vld [vmem:[%s2864_s18 + $0xe8] sm:$0xff]  ;;  %p2155_p0 = scmp.ne.s32.totalorder %s2620_s27, 1 }
  0x9b   : > { %v557_v3 = vld [vmem:[%s2864_s18 + $0x1e0] sm:$0xff]  ;;  %v575_v4 = vpack.c.bf16 %v527_v2, %v525_v1  ;;  %v559_v5 = vld [vmem:[%s2864_s18 + $0x1f0] sm:$0xff]  ;;  %v528_v7 = vld [vmem:[%s2864_s18 + $0xf8] sm:$0xff] }
  0x9c   : > { %v591_v8 = vpack.c.bf16 %v559_v5, %v557_v3  ;;  %v576_v9 = vpack.c.bf16 %v528_v7, %v526_v6  ;;  %v558_v10 = vld [vmem:[%s2864_s18 + $0x1e8] sm:$0xff]  ;;  %v560_v11 = vld [vmem:[%s2864_s18 + $0x1f8] sm:$0xff]  ;;  %v521_v12 = vld [vmem:[%s2864_s18 + $0xc0] sm:$0xff] }
  0x9d   : > { %753 = vmatpush.bf16.msra.mxu0 %v575_v4  ;;  %v592_v13 = vpack.c.bf16 %v560_v11, %v558_v10  ;;  %v523_v14 = vld [vmem:[%s2864_s18 + $0xd0] sm:$0xff]  ;;  %v553_v15 = vld [vmem:[%s2864_s18 + $0x1c0] sm:$0xff]  ;;  %v522_v19 = vld [vmem:[%s2864_s18 + $0xc8] sm:$0xff] }
  0x9e   : > { %v555_v16 = vld [vmem:[%s2864_s18 + $0x1d0] sm:$0xff]  ;;  %842 = vmatpush.bf16.msra.mxu1 %v591_v8  ;;  %931 = vmatpush.bf16.msra.mxu2 %v576_v9  ;;  %v573_v17 = vpack.c.bf16 %v523_v14, %v521_v12  ;;  %v524_v20 = vld [vmem:[%s2864_s18 + $0xd8] sm:$0xff]  ;;  %v554_v21 = vld [vmem:[%s2864_s18 + $0x1c8] sm:$0xff] }
  0x9f   : > { %v589_v18 = vpack.c.bf16 %v555_v16, %v553_v15  ;;  %1020 = vmatpush.bf16.msra.mxu3 %v592_v13  ;;  %v574_v22 = vpack.c.bf16 %v524_v20, %v522_v19  ;;  %v556_v23 = vld [vmem:[%s2864_s18 + $0x1d8] sm:$0xff]  ;;  %v517_v24 = vld [vmem:[%s2864_s18 + $0xa0] sm:$0xff]  ;;  %v519_v25 = vld [vmem:[%s2864_s18 + $0xb0] sm:$0xff] }
  0xa0   : > { %v590_v26 = vpack.c.bf16 %v556_v23, %v554_v21  ;;  %v549_v27 = vld [vmem:[%s2864_s18 + $0x1a0] sm:$0xff]  ;;  %v551_v28 = vld [vmem:[%s2864_s18 + $0x1b0] sm:$0xff]  ;;  %v518_v29 = vld [vmem:[%s2864_s18 + $0xa8] sm:$0xff]  ;;  %v571_v30 = vpack.c.bf16 %v519_v25, %v517_v24 }
  0xa1   : > { %754 = vmatpush.bf16.msra.mxu0 %v573_v17  ;;  %v520_v31 = vld [vmem:[%s2864_s18 + $0xb8] sm:$0xff]  ;;  %v550_v32 = vld [vmem:[%s2864_s18 + $0x1a8] sm:$0xff]  ;;  %v587_v34 = vpack.c.bf16 %v551_v28, %v549_v27  ;;  %v513_v36 = vld [vmem:[%s2864_s18 + $0x80] sm:$0xff] }
  0xa2   : > { %v552_v33 = vld [vmem:[%s2864_s18 + $0x1b8] sm:$0xff]  ;;  %843 = vmatpush.bf16.msra.mxu1 %v589_v18  ;;  %932 = vmatpush.bf16.msra.mxu2 %v574_v22  ;;  %v572_v35 = vpack.c.bf16 %v520_v31, %v518_v29  ;;  %v515_v37 = vld [vmem:[%s2864_s18 + $0x90] sm:$0xff]  ;;  %v545_v38 = vld [vmem:[%s2864_s18 + $0x180] sm:$0xff] }
  0xa3   : > { %1021 = vmatpush.bf16.msra.mxu3 %v590_v26  ;;  %v588_v39 = vpack.c.bf16 %v552_v33, %v550_v32  ;;  %v547_v40 = vld [vmem:[%s2864_s18 + $0x190] sm:$0xff]  ;;  %v514_v41 = vld [vmem:[%s2864_s18 + $0x88] sm:$0xff]  ;;  %v516_v42 = vld [vmem:[%s2864_s18 + $0x98] sm:$0xff]  ;;  %v569_v45 = vpack.c.bf16 %v515_v37, %v513_v36 }
  0xa4   : > { %v546_v43 = vld [vmem:[%s2864_s18 + $0x188] sm:$0xff]  ;;  %v548_v44 = vld [vmem:[%s2864_s18 + $0x198] sm:$0xff]  ;;  %v585_v46 = vpack.c.bf16 %v547_v40, %v545_v38  ;;  %v570_v47 = vpack.c.bf16 %v516_v42, %v514_v41  ;;  %v509_v48 = vld [vmem:[%s2864_s18 + $0x60] sm:$0xff] }
  0xa5   : > { %755 = vmatpush.bf16.msra.mxu0 %v571_v30  ;;  %v511_v49 = vld [vmem:[%s2864_s18 + $0x70] sm:$0xff]  ;;  %v541_v50 = vld [vmem:[%s2864_s18 + $0x160] sm:$0xff]  ;;  %v586_v51 = vpack.c.bf16 %v548_v44, %v546_v43  ;;  %v510_v53 = vld [vmem:[%s2864_s18 + $0x68] sm:$0xff] }
  0xa6   : > { %844 = vmatpush.bf16.msra.mxu1 %v587_v34  ;;  %933 = vmatpush.bf16.msra.mxu2 %v572_v35  ;;  %v543_v52 = vld [vmem:[%s2864_s18 + $0x170] sm:$0xff]  ;;  %v512_v54 = vld [vmem:[%s2864_s18 + $0x78] sm:$0xff]  ;;  %v542_v55 = vld [vmem:[%s2864_s18 + $0x168] sm:$0xff]  ;;  %v567_v57 = vpack.c.bf16 %v511_v49, %v509_v48 }
  0xa7   : > { %1022 = vmatpush.bf16.msra.mxu3 %v588_v39  ;;  %v544_v56 = vld [vmem:[%s2864_s18 + $0x178] sm:$0xff]  ;;  %v583_v58 = vpack.c.bf16 %v543_v52, %v541_v50  ;;  %v568_v59 = vpack.c.bf16 %v512_v54, %v510_v53  ;;  %v505_v60 = vld [vmem:[%s2864_s18 + $0x40] sm:$0xff]  ;;  %v507_v61 = vld [vmem:[%s2864_s18 + $0x50] sm:$0xff] }
  0xa8   : > { %v537_v62 = vld [vmem:[%s2864_s18 + $0x140] sm:$0xff]  ;;  %v584_v63 = vpack.c.bf16 %v544_v56, %v542_v55  ;;  %v539_v0 = vld [vmem:[%s2864_s18 + $0x150] sm:$0xff]  ;;  %v506_v1 = vld [vmem:[%s2864_s18 + $0x48] sm:$0xff]  ;;  %v565_v5 = vpack.c.bf16 %v507_v61, %v505_v60 }
  0xa9   : > { %756 = vmatpush.bf16.msra.mxu0 %v569_v45  ;;  %v508_v2 = vld [vmem:[%s2864_s18 + $0x58] sm:$0xff]  ;;  %v538_v3 = vld [vmem:[%s2864_s18 + $0x148] sm:$0xff]  ;;  %v581_v6 = vpack.c.bf16 %v539_v0, %v537_v62  ;;  %v501_v8 = vld [vmem:[%s2864_s18 + $0x20] sm:$0xff] }
  0xaa   : > { %845 = vmatpush.bf16.msra.mxu1 %v585_v46  ;;  %934 = vmatpush.bf16.msra.mxu2 %v570_v47  ;;  %v540_v4 = vld [vmem:[%s2864_s18 + $0x158] sm:$0xff]  ;;  %v566_v7 = vpack.c.bf16 %v508_v2, %v506_v1  ;;  %v503_v9 = vld [vmem:[%s2864_s18 + $0x30] sm:$0xff]  ;;  %v533_v10 = vld [vmem:[%s2864_s18 + $0x120] sm:$0xff] }
  0xab   : > { %1023 = vmatpush.bf16.msra.mxu3 %v586_v51  ;;  %v582_v11 = vpack.c.bf16 %v540_v4, %v538_v3  ;;  %v535_v12 = vld [vmem:[%s2864_s18 + $0x130] sm:$0xff]  ;;  %v502_v13 = vld [vmem:[%s2864_s18 + $0x28] sm:$0xff]  ;;  %v504_v14 = vld [vmem:[%s2864_s18 + $0x38] sm:$0xff]  ;;  %v563_v17 = vpack.c.bf16 %v503_v9, %v501_v8 }
  0xac   : > { %v534_v15 = vld [vmem:[%s2864_s18 + $0x128] sm:$0xff]  ;;  %v536_v16 = vld [vmem:[%s2864_s18 + $0x138] sm:$0xff]  ;;  %v579_v18 = vpack.c.bf16 %v535_v12, %v533_v10  ;;  %v564_v19 = vpack.c.bf16 %v504_v14, %v502_v13  ;;  %v497_v20 = vld [vmem:[%s2864_s18] sm:$0xff] }
  0xad   : > { %757 = vmatpush.bf16.msra.mxu0 %v567_v57  ;;  %v499_v21 = vld [vmem:[%s2864_s18 + $0x10] sm:$0xff]  ;;  %v529_v22 = vld [vmem:[%s2864_s18 + $0x100] sm:$0xff]  ;;  %v580_v23 = vpack.c.bf16 %v536_v16, %v534_v15  ;;  %v498_v25 = vld [vmem:[%s2864_s18 + $0x8] sm:$0xff] }
  0xae   : > { %846 = vmatpush.bf16.msra.mxu1 %v583_v58  ;;  %935 = vmatpush.bf16.msra.mxu2 %v568_v59  ;;  %v531_v24 = vld [vmem:[%s2864_s18 + $0x110] sm:$0xff]  ;;  %v500_v26 = vld [vmem:[%s2864_s18 + $0x18] sm:$0xff]  ;;  %v530_v27 = vld [vmem:[%s2864_s18 + $0x108] sm:$0xff]  ;;  %v561_v29 = vpack.c.bf16 %v499_v21, %v497_v20 }
  0xaf   : > { %1024 = vmatpush.bf16.msra.mxu3 %v584_v63  ;;  %v532_v28 = vld [vmem:[%s2864_s18 + $0x118] sm:$0xff]  ;;  %v2029_v30 = vld [vmem:[%s2872_s10] sm:$0xf]  ;;  %v2167_v31 = vld [vmem:[%s2872_s10 + $0x4] sm:$0xf0]  ;;  %v577_v32 = vpack.c.bf16 %v531_v24, %v529_v22  ;;  %v562_v33 = vpack.c.bf16 %v500_v26, %v498_v25 }
  0xb0   : > { %v2166_v34 = vld [vmem:[%s2872_s10 + $0x4] sm:$0xf]  ;;  %v2031_v35 = vld [vmem:[%s2872_s10 + $0x8] sm:$0xf0]  ;;  %v578_v36 = vpack.c.bf16 %v532_v28, %v530_v27  ;;  %v2030_v37 = vor.u32 %v2167_v31, %v2029_v30  ;;  %v2037_v39 = vld [vmem:[%s2872_s10 + $0x10] sm:$0xf] }
  0xb1   : > { %758 = vmatpush.bf16.msra.mxu0 %v565_v5  ;;  %v2034_v38 = vor.u32 %v2166_v34, %v2031_v35  ;;  %v2169_v40 = vld [vmem:[%s2872_s10 + $0x14] sm:$0xf0]  ;;  %v2168_v41 = vld [vmem:[%s2872_s10 + $0x14] sm:$0xf]  ;;  %v2039_v42 = vld [vmem:[%s2872_s10 + $0x18] sm:$0xf0] }
  0xb2   : > { %847 = vmatpush.bf16.msra.mxu1 %v581_v6  ;;  %936 = vmatpush.bf16.msra.mxu2 %v566_v7  ;;  %v2038_v43 = vor.u32 %v2169_v40, %v2037_v39  ;;  %v2042_v44 = vor.u32 %v2168_v41, %v2039_v42  ;;  %v2045_v45 = vld [vmem:[%s2872_s10 + $0x20] sm:$0xf]  ;;  %v2171_v46 = vld [vmem:[%s2872_s10 + $0x24] sm:$0xf0]  ;;  %v2170_v47 = vld [vmem:[%s2872_s10 + $0x24] sm:$0xf] }
  0xb3   : > { %1025 = vmatpush.bf16.msra.mxu3 %v582_v11  ;;  %v2047_v48 = vld [vmem:[%s2872_s10 + $0x28] sm:$0xf0]  ;;  %v2046_v49 = vor.u32 %v2171_v46, %v2045_v45  ;;  %v2053_v51 = vld [vmem:[%s2872_s10 + $0x30] sm:$0xf]  ;;  %v2173_v52 = vld [vmem:[%s2872_s10 + $0x34] sm:$0xf0] }
  0xb4   : > { %v2050_v50 = vor.u32 %v2170_v47, %v2047_v48  ;;  %v2172_v53 = vld [vmem:[%s2872_s10 + $0x34] sm:$0xf]  ;;  %v2055_v54 = vld [vmem:[%s2872_s10 + $0x38] sm:$0xf0]  ;;  %v2054_v55 = vor.u32 %v2173_v52, %v2053_v51  ;;  %v2061_v57 = vld [vmem:[%s2872_s10 + $0x40] sm:$0xf] }
  0xb5   : > { %759 = vmatpush.bf16.msra.mxu0 %v563_v17  ;;  %v2058_v56 = vor.u32 %v2172_v53, %v2055_v54  ;;  %v2175_v58 = vld [vmem:[%s2872_s10 + $0x44] sm:$0xf0]  ;;  %v2174_v59 = vld [vmem:[%s2872_s10 + $0x44] sm:$0xf]  ;;  %v2063_v60 = vld [vmem:[%s2872_s10 + $0x48] sm:$0xf0] }
  0xb6   : > { %848 = vmatpush.bf16.msra.mxu1 %v579_v18  ;;  %937 = vmatpush.bf16.msra.mxu2 %v564_v19  ;;  %v2062_v61 = vor.u32 %v2175_v58, %v2061_v57  ;;  %v2066_v62 = vor.u32 %v2174_v59, %v2063_v60  ;;  %v2069_v63 = vld [vmem:[%s2872_s10 + $0x50] sm:$0xf]  ;;  %v2177_v0 = vld [vmem:[%s2872_s10 + $0x54] sm:$0xf0]  ;;  %v2176_v1 = vld [vmem:[%s2872_s10 + $0x54] sm:$0xf] }
  0xb7   : > { %1026 = vmatpush.bf16.msra.mxu3 %v580_v23  ;;  %v2071_v2 = vld [vmem:[%s2872_s10 + $0x58] sm:$0xf0]  ;;  %v2070_v3 = vor.u32 %v2177_v0, %v2069_v63  ;;  %v2077_v5 = vld [vmem:[%s2872_s10 + $0x60] sm:$0xf]  ;;  %v2179_v6 = vld [vmem:[%s2872_s10 + $0x64] sm:$0xf0] }
  0xb8   : > { %v2074_v4 = vor.u32 %v2176_v1, %v2071_v2  ;;  %v2178_v7 = vld [vmem:[%s2872_s10 + $0x64] sm:$0xf]  ;;  %v2079_v8 = vld [vmem:[%s2872_s10 + $0x68] sm:$0xf0]  ;;  %v2078_v9 = vor.u32 %v2179_v6, %v2077_v5  ;;  %v2085_v11 = vld [vmem:[%s2872_s10 + $0x70] sm:$0xf] }
  0xb9   : > { %760 = vmatpush.bf16.msra.mxu0 %v561_v29  ;;  %v2082_v10 = vor.u32 %v2178_v7, %v2079_v8  ;;  %v2181_v12 = vld [vmem:[%s2872_s10 + $0x74] sm:$0xf0]  ;;  %v2180_v13 = vld [vmem:[%s2872_s10 + $0x74] sm:$0xf]  ;;  %v2087_v14 = vld [vmem:[%s2872_s10 + $0x78] sm:$0xf0] }
  0xba   : > { %849 = vmatpush.bf16.msra.mxu1 %v577_v32  ;;  %938 = vmatpush.bf16.msra.mxu2 %v562_v33  ;;  %v2086_v15 = vor.u32 %v2181_v12, %v2085_v11  ;;  %v2090_v16 = vor.u32 %v2180_v13, %v2087_v14  ;;  %v2093_v17 = vld [vmem:[%s2872_s10 + $0x80] sm:$0xf]  ;;  %v2183_v18 = vld [vmem:[%s2872_s10 + $0x84] sm:$0xf0]  ;;  %v2182_v19 = vld [vmem:[%s2872_s10 + $0x84] sm:$0xf] }
  0xbb   : > { %1027 = vmatpush.bf16.msra.mxu3 %v578_v36  ;;  %v2095_v20 = vld [vmem:[%s2872_s10 + $0x88] sm:$0xf0]  ;;  %v2094_v21 = vor.u32 %v2183_v18, %v2093_v17  ;;  %v401_v24 = vld [vmem:[#allocation2 + $0xb0] sm:$0xff]  ;;  %v403_v33 = vld [vmem:[#allocation2 + $0xd8] sm:$0xff] }
  0xbc   : > { %761 = vmatmul.bf16.vlgmr.msra.gmra.mxu0 %v2030_v37  ;;  %v2098_v23 = vor.u32 %v2182_v19, %v2095_v20  ;;  %v402_v29 = vld [vmem:[#allocation2 + $0x1b0] sm:$0xff]  ;;  %v2185_v39 = vld [vmem:[%s2872_s10 + $0x94] sm:$0xf0]  ;;  %v2103_v41 = vld [vmem:[%s2872_s10 + $0x98] sm:$0xf0] }
  0xbd   : > { %850 = vmatmul.bf16.vlgmr.msra.gmra.mxu1 %v2034_v38  ;;  %939 = vmatmul.bf16.vlgmr.msra.gmra.mxu2 %v2030_v37  ;;  %v2184_v40 = vld [vmem:[%s2872_s10 + $0x94] sm:$0xf]  ;;  %v2109_v0 = vld [vmem:[%s2872_s10 + $0xa0] sm:$0xf]  ;;  %v2187_v1 = vld [vmem:[%s2872_s10 + $0xa4] sm:$0xf0] }
  0xbe   : > { %1028 = vmatmul.bf16.vlgmr.msra.gmra.mxu3 %v2034_v38  ;;  %v2101_v38 = vld [vmem:[%s2872_s10 + $0x90] sm:$0xf]  ;;  %v2106_v47 = vor.u32 %v2184_v40, %v2103_v41  ;;  %v2186_v2 = vld [vmem:[%s2872_s10 + $0xa4] sm:$0xf]  ;;  %v2110_v5 = vor.u32 %v2187_v1, %v2109_v0  ;;  %v408_v6 = vld [vmem:[#allocation2 + $0x48] sm:$0xff] }
  0xbf   : > { %v407_v59 = vld [vmem:[#allocation2 + $0x130] sm:$0xff]  ;;  %v409_v11 = vld [vmem:[#allocation2 + $0x180] sm:$0xff] }
  0xc0   : > { %v410_v17 = vld [vmem:[#allocation2 + $0x110] sm:$0xff] }
  0xcc   : > { %766 = vmatmul.bf16.gmra.mxu0 %v2038_v43 }
  0xcd   : > { %855 = vmatmul.bf16.gmra.mxu1 %v2042_v44  ;;  %944 = vmatmul.bf16.gmra.mxu2 %v2038_v43  ;;  %v2102_v43 = vor.u32 %v2185_v39, %v2101_v38 }
  0xce   : > { %1033 = vmatmul.bf16.gmra.mxu3 %v2042_v44  ;;  %v404_v44 = vld [vmem:[#allocation2 + $0x18] sm:$0xff] }
  0xdc   : > { %771 = vmatmul.bf16.gmra.mxu0 %v2046_v49 }
  0xdd   : > { %860 = vmatmul.bf16.gmra.mxu1 %v2050_v50  ;;  %949 = vmatmul.bf16.gmra.mxu2 %v2046_v49  ;;  %v405_v49 = vld [vmem:[#allocation2 + $0x50] sm:$0xff] }
  0xde   : > { %1038 = vmatmul.bf16.gmra.mxu3 %v2050_v50 }
  0xec   : > { %776 = vmatmul.bf16.gmra.mxu0 %v2054_v55 }
  0xed   : > { %865 = vmatmul.bf16.gmra.mxu1 %v2058_v56  ;;  %954 = vmatmul.bf16.gmra.mxu2 %v2054_v55  ;;  %v406_v55 = vld [vmem:[#allocation2 + $0x168] sm:$0xff] }
  0xee   : > { %1043 = vmatmul.bf16.gmra.mxu3 %v2058_v56 }
  0xfc   : > { %781 = vmatmul.bf16.gmra.mxu0 %v2062_v61 }
  0xfd   : > { %870 = vmatmul.bf16.gmra.mxu1 %v2066_v62  ;;  %959 = vmatmul.bf16.gmra.mxu2 %v2062_v61 }
  0xfe   : > { %1048 = vmatmul.bf16.gmra.mxu3 %v2066_v62 }
 0x10c   : > { %786 = vmatmul.bf16.gmra.mxu0 %v2070_v3 }
 0x10d   : > { %875 = vmatmul.bf16.gmra.mxu1 %v2074_v4  ;;  %964 = vmatmul.bf16.gmra.mxu2 %v2070_v3  ;;  %v2111_v3 = vld [vmem:[%s2872_s10 + $0xa8] sm:$0xf0] }
 0x10e   : > { %1053 = vmatmul.bf16.gmra.mxu3 %v2074_v4 }
 0x11c   : > { %791 = vmatmul.bf16.gmra.mxu0 %v2078_v9 }
 0x11d   : > { %880 = vmatmul.bf16.gmra.mxu1 %v2082_v10  ;;  %969 = vmatmul.bf16.gmra.mxu2 %v2078_v9  ;;  %v2114_v9 = vor.u32 %v2186_v2, %v2111_v3 }
 0x11e   : > { %1058 = vmatmul.bf16.gmra.mxu3 %v2082_v10 }
 0x12c   : > { %796 = vmatmul.bf16.gmra.mxu0 %v2086_v15 }
 0x12d   : > { %885 = vmatmul.bf16.gmra.mxu1 %v2090_v16  ;;  %974 = vmatmul.bf16.gmra.mxu2 %v2086_v15 }
 0x12e   : > { %1063 = vmatmul.bf16.gmra.mxu3 %v2090_v16 }
 0x139   : > { %v762_v22 = vpop.f32.mrf.mxu0 }
 0x13a   : > { %v851_v25 = vpop.f32.mrf.mxu1 }
 0x13b   : > { %v852_v26 = vadd.f32 %v851_v25, %v762_v22 }
 0x13c   : > { %801 = vmatmul.bf16.gmra.mxu0 %v2094_v21 }
 0x13d   : > { %v1109_v27 = vadd.f32 %v852_v26, %v401_v24  ;;  %890 = vmatmul.bf16.gmra.mxu1 %v2098_v23  ;;  %979 = vmatmul.bf16.gmra.mxu2 %v2094_v21  ;;  %v411_v21 = vld [vmem:[#allocation2 + $0x118] sm:$0xff]  ;;  %v2117_v26 = vld [vmem:[%s2872_s10 + $0xb0] sm:$0xf] }
 0x13e   : > { %1068 = vmatmul.bf16.gmra.mxu3 %v2098_v23 }
 0x13f   : > { %1173 = vst [vmem:[#allocation2 + $0xb0] sm:$0xff] %v1109_v27  ;;  %v2189_v27 = vld [vmem:[%s2872_s10 + $0xb4] sm:$0xf0] }
 0x140   : > { %v940_v28 = vpop.f32.mrf.mxu2 }
 0x141   : > { %v1029_v30 = vpop.f32.mrf.mxu3  ;;  %v764_v31 = vpop.f32.mrf.mxu0 }
 0x142   : > { %v1030_v32 = vadd.f32 %v1029_v30, %v940_v28  ;;  %v853_v34 = vpop.f32.mrf.mxu1  ;;  %v2188_v28 = vld [vmem:[%s2872_s10 + $0xb4] sm:$0xf] }
 0x143   : > { %v854_v35 = vadd.f32 %v853_v34, %v764_v31  ;;  %v2118_v31 = vor.u32 %v2189_v27, %v2117_v26 }
 0x144   : > { %v1110_v36 = vadd.f32 %v1030_v32, %v402_v29  ;;  %v2119_v29 = vld [vmem:[%s2872_s10 + $0xb8] sm:$0xf0] }
 0x145   : > { %v1111_v37 = vadd.f32 %v854_v35, %v403_v33  ;;  %v412_v32 = vld [vmem:[#allocation2 + $0x98] sm:$0xff]  ;;  %v2122_v35 = vor.u32 %v2188_v28, %v2119_v29 }
 0x146   : > { %1174 = vst [vmem:[#allocation2 + $0x1b0] sm:$0xff] %v1110_v36 }
 0x147   : > { %1175 = vst [vmem:[#allocation2 + $0xd8] sm:$0xff] %v1111_v37  ;;  %v413_v37 = vld [vmem:[#allocation2 + $0x120] sm:$0xff] }
 0x148   : > { %v942_v42 = vpop.f32.mrf.mxu2 }
 0x149   : > { %v1031_v45 = vpop.f32.mrf.mxu3  ;;  %v767_v46 = vpop.f32.mrf.mxu0 }
 0x14a   : > { %v1032_v48 = vadd.f32 %v1031_v45, %v942_v42  ;;  %v856_v50 = vpop.f32.mrf.mxu1 }
 0x14b   : > { %v857_v51 = vadd.f32 %v856_v50, %v767_v46 }
 0x14c   : > { %v1112_v52 = vadd.f32 %v1032_v48, %v404_v44  ;;  %806 = vmatmul.bf16.gmra.mxu0 %v2102_v43 }
 0x14d   : > { %v1113_v53 = vadd.f32 %v857_v51, %v405_v49  ;;  %895 = vmatmul.bf16.gmra.mxu1 %v2106_v47  ;;  %984 = vmatmul.bf16.gmra.mxu2 %v2102_v43  ;;  %v414_v43 = vld [vmem:[#allocation2 + $0x150] sm:$0xff] }
 0x14e   : > { %1176 = vst [vmem:[#allocation2 + $0x18] sm:$0xff] %v1112_v52  ;;  %1073 = vmatmul.bf16.gmra.mxu3 %v2106_v47  ;;  %v415_v47 = vld [vmem:[#allocation2 + $0x108] sm:$0xff]  ;;  %v2125_v52 = vld [vmem:[%s2872_s10 + $0xc0] sm:$0xf] }
 0x14f   : > { %1177 = vst [vmem:[#allocation2 + $0x50] sm:$0xff] %v1113_v53  ;;  %v2191_v53 = vld [vmem:[%s2872_s10 + $0xc4] sm:$0xf0] }
 0x150   : > { %v945_v54 = vpop.f32.mrf.mxu2 }
 0x151   : > { %v1034_v56 = vpop.f32.mrf.mxu3  ;;  %v769_v57 = vpop.f32.mrf.mxu0 }
 0x152   : > { %v1035_v58 = vadd.f32 %v1034_v56, %v945_v54  ;;  %v858_v60 = vpop.f32.mrf.mxu1  ;;  %v2190_v54 = vld [vmem:[%s2872_s10 + $0xc4] sm:$0xf] }
 0x153   : > { %v859_v61 = vadd.f32 %v858_v60, %v769_v57  ;;  %v2126_v57 = vor.u32 %v2191_v53, %v2125_v52 }
 0x154   : > { %v1114_v62 = vadd.f32 %v1035_v58, %v406_v55  ;;  %v2127_v55 = vld [vmem:[%s2872_s10 + $0xc8] sm:$0xf0]  ;;  %v416_v58 = vld [vmem:[#allocation2 + $0x60] sm:$0xff] }
 0x155   : > { %v1115_v63 = vadd.f32 %v859_v61, %v407_v59  ;;  %v2130_v61 = vor.u32 %v2190_v54, %v2127_v55 }
 0x156   : > { %1178 = vst [vmem:[#allocation2 + $0x168] sm:$0xff] %v1114_v62 }
 0x157   : > { %1179 = vst [vmem:[#allocation2 + $0x130] sm:$0xff] %v1115_v63  ;;  %v417_v63 = vld [vmem:[#allocation2 + $0xe0] sm:$0xff] }
 0x158   : > { %v947_v4 = vpop.f32.mrf.mxu2 }
 0x159   : > { %v1036_v7 = vpop.f32.mrf.mxu3  ;;  %v772_v8 = vpop.f32.mrf.mxu0 }
 0x15a   : > { %v1037_v10 = vadd.f32 %v1036_v7, %v947_v4  ;;  %v861_v12 = vpop.f32.mrf.mxu1 }
 0x15b   : > { %v862_v13 = vadd.f32 %v861_v12, %v772_v8 }
 0x15c   : > { %v1116_v14 = vadd.f32 %v1037_v10, %v408_v6  ;;  %811 = vmatmul.bf16.gmra.mxu0 %v2110_v5 }
 0x15d   : > { %v1117_v15 = vadd.f32 %v862_v13, %v409_v11  ;;  %900 = vmatmul.bf16.gmra.mxu1 %v2114_v9  ;;  %989 = vmatmul.bf16.gmra.mxu2 %v2110_v5  ;;  %v418_v5 = vld [vmem:[#allocation2 + $0x188] sm:$0xff] }
 0x15e   : > { %1180 = vst [vmem:[#allocation2 + $0x48] sm:$0xff] %v1116_v14  ;;  %1078 = vmatmul.bf16.gmra.mxu3 %v2114_v9  ;;  %v419_v9 = vld [vmem:[#allocation2 + $0x138] sm:$0xff]  ;;  %v2133_v14 = vld [vmem:[%s2872_s10 + $0xd0] sm:$0xf] }
 0x15f   : > { %1181 = vst [vmem:[#allocation2 + $0x180] sm:$0xff] %v1117_v15  ;;  %v2193_v15 = vld [vmem:[%s2872_s10 + $0xd4] sm:$0xf0] }
 0x160   : > { %v950_v16 = vpop.f32.mrf.mxu2 }
 0x161   : > { %v1039_v18 = vpop.f32.mrf.mxu3  ;;  %v774_v19 = vpop.f32.mrf.mxu0 }
 0x162   : > { %v1040_v20 = vadd.f32 %v1039_v18, %v950_v16  ;;  %v863_v22 = vpop.f32.mrf.mxu1  ;;  %v2192_v16 = vld [vmem:[%s2872_s10 + $0xd4] sm:$0xf] }
 0x163   : > { %v864_v23 = vadd.f32 %v863_v22, %v774_v19  ;;  %v2134_v19 = vor.u32 %v2193_v15, %v2133_v14 }
 0x164   : > { %v1118_v24 = vadd.f32 %v1040_v20, %v410_v17  ;;  %v2135_v17 = vld [vmem:[%s2872_s10 + $0xd8] sm:$0xf0]  ;;  %v420_v20 = vld [vmem:[#allocation2 + $0x140] sm:$0xff] }
 0x165   : > { %v1119_v25 = vadd.f32 %v864_v23, %v411_v21  ;;  %v2138_v23 = vor.u32 %v2192_v16, %v2135_v17 }
 0x166   : > { %1182 = vst [vmem:[#allocation2 + $0x110] sm:$0xff] %v1118_v24 }
 0x167   : > { %1183 = vst [vmem:[#allocation2 + $0x118] sm:$0xff] %v1119_v25  ;;  %v421_v25 = vld [vmem:[#allocation2 + $0x80] sm:$0xff] }
 0x168   : > { %v952_v30 = vpop.f32.mrf.mxu2 }
 0x169   : > { %v1041_v33 = vpop.f32.mrf.mxu3  ;;  %v777_v34 = vpop.f32.mrf.mxu0 }
 0x16a   : > { %v1042_v36 = vadd.f32 %v1041_v33, %v952_v30  ;;  %v866_v38 = vpop.f32.mrf.mxu1 }
 0x16b   : > { %v867_v39 = vadd.f32 %v866_v38, %v777_v34 }
 0x16c   : > { %v1120_v40 = vadd.f32 %v1042_v36, %v412_v32  ;;  %816 = vmatmul.bf16.gmra.mxu0 %v2118_v31 }
 0x16d   : > { %v1121_v41 = vadd.f32 %v867_v39, %v413_v37  ;;  %905 = vmatmul.bf16.gmra.mxu1 %v2122_v35  ;;  %994 = vmatmul.bf16.gmra.mxu2 %v2118_v31  ;;  %v422_v31 = vld [vmem:[#allocation2 + $0x1a8] sm:$0xff] }
 0x16e   : > { %1184 = vst [vmem:[#allocation2 + $0x98] sm:$0xff] %v1120_v40  ;;  %1083 = vmatmul.bf16.gmra.mxu3 %v2122_v35  ;;  %v423_v35 = vld [vmem:[#allocation2 + $0x1b8] sm:$0xff]  ;;  %v2141_v40 = vld [vmem:[%s2872_s10 + $0xe0] sm:$0xf] }
 0x16f   : > { %1185 = vst [vmem:[#allocation2 + $0x120] sm:$0xff] %v1121_v41  ;;  %v2195_v41 = vld [vmem:[%s2872_s10 + $0xe4] sm:$0xf0] }
 0x170   : > { %v955_v42 = vpop.f32.mrf.mxu2 }
 0x171   : > { %v1044_v44 = vpop.f32.mrf.mxu3  ;;  %v779_v45 = vpop.f32.mrf.mxu0 }
 0x172   : > { %v1045_v46 = vadd.f32 %v1044_v44, %v955_v42  ;;  %v868_v48 = vpop.f32.mrf.mxu1  ;;  %v2194_v42 = vld [vmem:[%s2872_s10 + $0xe4] sm:$0xf] }
 0x173   : > { %v869_v49 = vadd.f32 %v868_v48, %v779_v45  ;;  %v2142_v45 = vor.u32 %v2195_v41, %v2141_v40 }
 0x174   : > { %v1122_v50 = vadd.f32 %v1045_v46, %v414_v43  ;;  %v2143_v43 = vld [vmem:[%s2872_s10 + $0xe8] sm:$0xf0] }
 0x175   : > { %v1123_v51 = vadd.f32 %v869_v49, %v415_v47  ;;  %v424_v46 = vld [vmem:[#allocation2 + $0x28] sm:$0xff]  ;;  %v2146_v49 = vor.u32 %v2194_v42, %v2143_v43  ;;  %v435_v43 = vld [vmem:[#allocation2 + $0x100] sm:$0xff] }
 0x176   : > { %1186 = vst [vmem:[#allocation2 + $0x150] sm:$0xff] %v1122_v50 }
 0x177   : > { %1187 = vst [vmem:[#allocation2 + $0x108] sm:$0xff] %v1123_v51  ;;  %v425_v51 = vld [vmem:[#allocation2 + $0x1e8] sm:$0xff] }
 0x178   : > { %v957_v56 = vpop.f32.mrf.mxu2 }
 0x179   : > { %v1046_v59 = vpop.f32.mrf.mxu3  ;;  %v782_v60 = vpop.f32.mrf.mxu0 }
 0x17a   : > { %v1047_v62 = vadd.f32 %v1046_v59, %v957_v56  ;;  %v871_v0 = vpop.f32.mrf.mxu1 }
 0x17b   : > { %v872_v1 = vadd.f32 %v871_v0, %v782_v60 }
 0x17c   : > { %v1124_v2 = vadd.f32 %v1047_v62, %v416_v58  ;;  %821 = vmatmul.bf16.gmra.mxu0 %v2126_v57 }
 0x17d   : > { %v1125_v3 = vadd.f32 %v872_v1, %v417_v63  ;;  %910 = vmatmul.bf16.gmra.mxu1 %v2130_v61  ;;  %999 = vmatmul.bf16.gmra.mxu2 %v2126_v57  ;;  %v426_v57 = vld [vmem:[#allocation2 + $0xf8] sm:$0xff] }
 0x17e   : > { %1188 = vst [vmem:[#allocation2 + $0x60] sm:$0xff] %v1124_v2  ;;  %1088 = vmatmul.bf16.gmra.mxu3 %v2130_v61  ;;  %v427_v61 = vld [vmem:[#allocation2 + $0x160] sm:$0xff]  ;;  %v2149_v2 = vld [vmem:[%s2872_s10 + $0xf0] sm:$0xf] }
 0x17f   : > { %1189 = vst [vmem:[#allocation2 + $0xe0] sm:$0xff] %v1125_v3  ;;  %v2197_v3 = vld [vmem:[%s2872_s10 + $0xf4] sm:$0xf0] }
 0x180   : > { %v960_v4 = vpop.f32.mrf.mxu2 }
 0x181   : > { %v1049_v6 = vpop.f32.mrf.mxu3  ;;  %v784_v7 = vpop.f32.mrf.mxu0 }
 0x182   : > { %v1050_v8 = vadd.f32 %v1049_v6, %v960_v4  ;;  %v873_v10 = vpop.f32.mrf.mxu1  ;;  %v2196_v4 = vld [vmem:[%s2872_s10 + $0xf4] sm:$0xf] }
 0x183   : > { %v874_v11 = vadd.f32 %v873_v10, %v784_v7  ;;  %v2150_v7 = vor.u32 %v2197_v3, %v2149_v2 }
 0x184   : > { %v1126_v12 = vadd.f32 %v1050_v8, %v418_v5  ;;  %v2151_v5 = vld [vmem:[%s2872_s10 + $0xf8] sm:$0xf0]  ;;  %v428_v8 = vld [vmem:[#allocation2 + $0x30] sm:$0xff] }
 0x185   : > { %v1127_v13 = vadd.f32 %v874_v11, %v419_v9  ;;  %v2154_v11 = vor.u32 %v2196_v4, %v2151_v5  ;;  %v440_v5 = vld [vmem:[#allocation2 + $0x128] sm:$0xff] }
 0x186   : > { %1190 = vst [vmem:[#allocation2 + $0x188] sm:$0xff] %v1126_v12 }
 0x187   : > { %1191 = vst [vmem:[#allocation2 + $0x138] sm:$0xff] %v1127_v13  ;;  %v429_v13 = vld [vmem:[#allocation2 + $0x1e0] sm:$0xff] }
 0x188   : > { %v962_v18 = vpop.f32.mrf.mxu2 }
 0x189   : > { %v1051_v21 = vpop.f32.mrf.mxu3  ;;  %v787_v22 = vpop.f32.mrf.mxu0 }
 0x18a   : > { %v1052_v24 = vadd.f32 %v1051_v21, %v962_v18  ;;  %v876_v26 = vpop.f32.mrf.mxu1 }
 0x18b   : > { %v877_v27 = vadd.f32 %v876_v26, %v787_v22 }
 0x18c   : > { %v1128_v28 = vadd.f32 %v1052_v24, %v420_v20  ;;  %826 = vmatmul.bf16.gmra.mxu0 %v2134_v19 }
 0x18d   : > { %v1129_v29 = vadd.f32 %v877_v27, %v421_v25  ;;  %915 = vmatmul.bf16.gmra.mxu1 %v2138_v23  ;;  %1004 = vmatmul.bf16.gmra.mxu2 %v2134_v19  ;;  %v430_v19 = vld [vmem:[#allocation2] sm:$0xff] }
 0x18e   : > { %1192 = vst [vmem:[#allocation2 + $0x140] sm:$0xff] %v1128_v28  ;;  %1093 = vmatmul.bf16.gmra.mxu3 %v2138_v23  ;;  %v431_v23 = vld [vmem:[#allocation2 + $0xf0] sm:$0xff] }
 0x18f   : > { %1193 = vst [vmem:[#allocation2 + $0x80] sm:$0xff] %v1129_v29  ;;  %v432_v29 = vld [vmem:[#allocation2 + $0x8] sm:$0xff] }
 0x190   : > { %v965_v30 = vpop.f32.mrf.mxu2 }
 0x191   : > { %v1054_v32 = vpop.f32.mrf.mxu3  ;;  %v789_v33 = vpop.f32.mrf.mxu0 }
 0x192   : > { %v1055_v34 = vadd.f32 %v1054_v32, %v965_v30  ;;  %v878_v36 = vpop.f32.mrf.mxu1 }
 0x193   : > { %v879_v37 = vadd.f32 %v878_v36, %v789_v33  ;;  %v433_v33 = vld [vmem:[#allocation2 + $0x148] sm:$0xff] }
 0x194   : > { %v1130_v38 = vadd.f32 %v1055_v34, %v422_v31 }
 0x195   : > { %v1131_v39 = vadd.f32 %v879_v37, %v423_v35 }
 0x196   : > { %1194 = vst [vmem:[#allocation2 + $0x1a8] sm:$0xff] %v1130_v38 }
 0x197   : > { %1195 = vst [vmem:[#allocation2 + $0x1b8] sm:$0xff] %v1131_v39  ;;  %v434_v39 = vld [vmem:[#allocation2 + $0x1d0] sm:$0xff] }
 0x198   : > { %v967_v44 = vpop.f32.mrf.mxu2 }
 0x199   : > { %v1056_v47 = vpop.f32.mrf.mxu3  ;;  %v792_v48 = vpop.f32.mrf.mxu0 }
 0x19a   : > { %v1057_v50 = vadd.f32 %v1056_v47, %v967_v44  ;;  %v881_v52 = vpop.f32.mrf.mxu1 }
 0x19b   : > { %v882_v53 = vadd.f32 %v881_v52, %v792_v48 }
 0x19c   : > { %v1132_v54 = vadd.f32 %v1057_v50, %v424_v46  ;;  %831 = vmatmul.bf16.gmra.mxu0 %v2142_v45 }
 0x19d   : > { %v1133_v55 = vadd.f32 %v882_v53, %v425_v51  ;;  %920 = vmatmul.bf16.gmra.mxu1 %v2146_v49  ;;  %1009 = vmatmul.bf16.gmra.mxu2 %v2142_v45  ;;  %v437_v53 = vld [vmem:[#allocation2 + $0x40] sm:$0xff] }
 0x19e   : > { %1196 = vst [vmem:[#allocation2 + $0x28] sm:$0xff] %v1132_v54  ;;  %1098 = vmatmul.bf16.gmra.mxu3 %v2146_v49  ;;  %v436_v49 = vld [vmem:[#allocation2 + $0xc8] sm:$0xff] }
 0x19f   : > { %1197 = vst [vmem:[#allocation2 + $0x1e8] sm:$0xff] %v1133_v55 }
 0x1a0   : > { %v970_v56 = vpop.f32.mrf.mxu2 }
 0x1a1   : > { %v1059_v58 = vpop.f32.mrf.mxu3  ;;  %v794_v59 = vpop.f32.mrf.mxu0 }
 0x1a2   : > { %v1060_v60 = vadd.f32 %v1059_v58, %v970_v56  ;;  %v883_v62 = vpop.f32.mrf.mxu1 }
 0x1a3   : > { %v884_v63 = vadd.f32 %v883_v62, %v794_v59  ;;  %v438_v59 = vld [vmem:[#allocation2 + $0x1f8] sm:$0xff] }
 0x1a4   : > { %v1134_v0 = vadd.f32 %v1060_v60, %v426_v57 }
 0x1a5   : > { %v1135_v1 = vadd.f32 %v884_v63, %v427_v61  ;;  %v439_v63 = vld [vmem:[#allocation2 + $0x20] sm:$0xff] }
 0x1a6   : > { %1198 = vst [vmem:[#allocation2 + $0xf8] sm:$0xff] %v1134_v0 }
 0x1a7   : > { %1199 = vst [vmem:[#allocation2 + $0x160] sm:$0xff] %v1135_v1 }
 0x1a8   : > { %v972_v6 = vpop.f32.mrf.mxu2 }
 0x1a9   : > { %v1061_v9 = vpop.f32.mrf.mxu3  ;;  %v797_v10 = vpop.f32.mrf.mxu0 }
 0x1aa   : > { %v1062_v12 = vadd.f32 %v1061_v9, %v972_v6  ;;  %v886_v14 = vpop.f32.mrf.mxu1  ;;  %v441_v9 = vld [vmem:[#allocation2 + $0x1a0] sm:$0xff] }
 0x1ab   : > { %v887_v15 = vadd.f32 %v886_v14, %v797_v10 }
 0x1ac   : > { %v1136_v16 = vadd.f32 %v1062_v12, %v428_v8  ;;  %836 = vmatmul.bf16.gmra.mxu0 %v2150_v7 }
 0x1ad   : > { %v1137_v17 = vadd.f32 %v887_v15, %v429_v13  ;;  %925 = vmatmul.bf16.gmra.mxu1 %v2154_v11  ;;  %1014 = vmatmul.bf16.gmra.mxu2 %v2150_v7  ;;  %v442_v15 = vld [vmem:[#allocation2 + $0x1f0] sm:$0xff] }
 0x1ae   : > { %1200 = vst [vmem:[#allocation2 + $0x30] sm:$0xff] %v1136_v16  ;;  %1103 = vmatmul.bf16.gmra.mxu3 %v2154_v11 }
 0x1af   : > { %1201 = vst [vmem:[#allocation2 + $0x1e0] sm:$0xff] %v1137_v17 }
 0x1b0   : > { %v975_v18 = vpop.f32.mrf.mxu2 }
 0x1b1   : > { %v1064_v20 = vpop.f32.mrf.mxu3  ;;  %v799_v21 = vpop.f32.mrf.mxu0 }
 0x1b2   : > { %v1065_v22 = vadd.f32 %v1064_v20, %v975_v18  ;;  %v888_v24 = vpop.f32.mrf.mxu1 }
 0x1b3   : > { %v889_v25 = vadd.f32 %v888_v24, %v799_v21 }
 0x1b4   : > { %v1138_v26 = vadd.f32 %v1065_v22, %v430_v19  ;;  %v443_v19 = vld [vmem:[#allocation2 + $0xe8] sm:$0xff] }
 0x1b5   : > { %v1139_v27 = vadd.f32 %v889_v25, %v431_v23  ;;  %v444_v25 = vld [vmem:[#allocation2 + $0x78] sm:$0xff] }
 0x1b6   : > { %1202 = vst [vmem:[#allocation2] sm:$0xff] %v1138_v26 }
 0x1b7   : > { %1203 = vst [vmem:[#allocation2 + $0xf0] sm:$0xff] %v1139_v27 }
 0x1b8   : > { %v977_v28 = vpop.f32.mrf.mxu2 }
 0x1b9   : > { %v1066_v30 = vpop.f32.mrf.mxu3  ;;  %v802_v31 = vpop.f32.mrf.mxu0 }
 0x1ba   : > { %v1067_v32 = vadd.f32 %v1066_v30, %v977_v28  ;;  %v891_v34 = vpop.f32.mrf.mxu1 }
 0x1bb   : > { %v892_v35 = vadd.f32 %v891_v34, %v802_v31 }
 0x1bc   : > { %v1140_v36 = vadd.f32 %v1067_v32, %v432_v29  ;;  %v445_v29 = vld [vmem:[#allocation2 + $0x70] sm:$0xff] }
 0x1bd   : > { %v1141_v37 = vadd.f32 %v892_v35, %v433_v33  ;;  %v446_v35 = vld [vmem:[#allocation2 + $0x90] sm:$0xff] }
 0x1be   : > { %1204 = vst [vmem:[#allocation2 + $0x8] sm:$0xff] %v1140_v36 }
 0x1bf   : > { %1205 = vst [vmem:[#allocation2 + $0x148] sm:$0xff] %v1141_v37 }
 0x1c0   : > { %v980_v38 = vpop.f32.mrf.mxu2 }
 0x1c1   : > { %v1069_v40 = vpop.f32.mrf.mxu3  ;;  %v804_v41 = vpop.f32.mrf.mxu0 }
 0x1c2   : > { %v1070_v42 = vadd.f32 %v1069_v40, %v980_v38  ;;  %v893_v44 = vpop.f32.mrf.mxu1 }
 0x1c3   : > { %v894_v45 = vadd.f32 %v893_v44, %v804_v41 }
 0x1c4   : > { %v1142_v46 = vadd.f32 %v1070_v42, %v434_v39  ;;  %v447_v39 = vld [vmem:[#allocation2 + $0x1d8] sm:$0xff] }
 0x1c5   : > { %v1143_v47 = vadd.f32 %v894_v45, %v435_v43  ;;  %v448_v45 = vld [vmem:[#allocation2 + $0xd0] sm:$0xff] }
 0x1c6   : > { %1206 = vst [vmem:[#allocation2 + $0x1d0] sm:$0xff] %v1142_v46 }
 0x1c7   : > { %1207 = vst [vmem:[#allocation2 + $0x100] sm:$0xff] %v1143_v47 }
 0x1c8   : > { %v982_v48 = vpop.f32.mrf.mxu2 }
 0x1c9   : > { %v1071_v50 = vpop.f32.mrf.mxu3  ;;  %v807_v51 = vpop.f32.mrf.mxu0 }
 0x1ca   : > { %v1072_v52 = vadd.f32 %v1071_v50, %v982_v48  ;;  %v896_v54 = vpop.f32.mrf.mxu1 }
 0x1cb   : > { %v897_v55 = vadd.f32 %v896_v54, %v807_v51 }
 0x1cc   : > { %v1144_v56 = vadd.f32 %v1072_v52, %v436_v49  ;;  %v449_v49 = vld [vmem:[#allocation2 + $0xb8] sm:$0xff] }
 0x1cd   : > { %v1145_v57 = vadd.f32 %v897_v55, %v437_v53  ;;  %v450_v55 = vld [vmem:[#allocation2 + $0x88] sm:$0xff] }
 0x1ce   : > { %1208 = vst [vmem:[#allocation2 + $0xc8] sm:$0xff] %v1144_v56 }
 0x1cf   : > { %1209 = vst [vmem:[#allocation2 + $0x40] sm:$0xff] %v1145_v57 }
 0x1d0   : > { %v985_v58 = vpop.f32.mrf.mxu2 }
 0x1d1   : > { %v1074_v60 = vpop.f32.mrf.mxu3  ;;  %v809_v61 = vpop.f32.mrf.mxu0 }
 0x1d2   : > { %v1075_v62 = vadd.f32 %v1074_v60, %v985_v58  ;;  %v898_v0 = vpop.f32.mrf.mxu1 }
 0x1d3   : > { %v899_v1 = vadd.f32 %v898_v0, %v809_v61 }
 0x1d4   : > { %v1146_v2 = vadd.f32 %v1075_v62, %v438_v59  ;;  %v451_v59 = vld [vmem:[#allocation2 + $0xa8] sm:$0xff] }
 0x1d5   : > { %v1147_v3 = vadd.f32 %v899_v1, %v439_v63  ;;  %v452_v1 = vld [vmem:[#allocation2 + $0x1c8] sm:$0xff] }
 0x1d6   : > { %1210 = vst [vmem:[#allocation2 + $0x1f8] sm:$0xff] %v1146_v2 }
 0x1d7   : > { %1211 = vst [vmem:[#allocation2 + $0x20] sm:$0xff] %v1147_v3 }
 0x1d8   : > { %v987_v4 = vpop.f32.mrf.mxu2 }
 0x1d9   : > { %v1076_v6 = vpop.f32.mrf.mxu3  ;;  %v812_v7 = vpop.f32.mrf.mxu0 }
 0x1da   : > { %v1077_v8 = vadd.f32 %v1076_v6, %v987_v4  ;;  %v901_v10 = vpop.f32.mrf.mxu1 }
 0x1db   : > { %v902_v11 = vadd.f32 %v901_v10, %v812_v7 }
 0x1dc   : > { %v1148_v12 = vadd.f32 %v1077_v8, %v440_v5  ;;  %v453_v5 = vld [vmem:[#allocation2 + $0x170] sm:$0xff] }
 0x1dd   : > { %v1149_v13 = vadd.f32 %v902_v11, %v441_v9  ;;  %v454_v11 = vld [vmem:[#allocation2 + $0x178] sm:$0xff] }
 0x1de   : > { %1212 = vst [vmem:[#allocation2 + $0x128] sm:$0xff] %v1148_v12 }
 0x1df   : > { %1213 = vst [vmem:[#allocation2 + $0x1a0] sm:$0xff] %v1149_v13 }
 0x1e0   : > { %v990_v14 = vpop.f32.mrf.mxu2 }
 0x1e1   : > { %v1079_v16 = vpop.f32.mrf.mxu3  ;;  %v814_v17 = vpop.f32.mrf.mxu0 }
 0x1e2   : > { %v1080_v18 = vadd.f32 %v1079_v16, %v990_v14  ;;  %v903_v20 = vpop.f32.mrf.mxu1 }
 0x1e3   : > { %v904_v21 = vadd.f32 %v903_v20, %v814_v17 }
 0x1e4   : > { %v1150_v22 = vadd.f32 %v1080_v18, %v442_v15  ;;  %v455_v15 = vld [vmem:[#allocation2 + $0x68] sm:$0xff] }
 0x1e5   : > { %v1151_v23 = vadd.f32 %v904_v21, %v443_v19  ;;  %v456_v21 = vld [vmem:[#allocation2 + $0x190] sm:$0xff] }
 0x1e6   : > { %1214 = vst [vmem:[#allocation2 + $0x1f0] sm:$0xff] %v1150_v22 }
 0x1e7   : > { %1215 = vst [vmem:[#allocation2 + $0xe8] sm:$0xff] %v1151_v23 }
 0x1e8   : > { %v992_v24 = vpop.f32.mrf.mxu2 }
 0x1e9   : > { %v1081_v26 = vpop.f32.mrf.mxu3  ;;  %v817_v27 = vpop.f32.mrf.mxu0 }
 0x1ea   : > { %v1082_v28 = vadd.f32 %v1081_v26, %v992_v24  ;;  %v906_v30 = vpop.f32.mrf.mxu1 }
 0x1eb   : > { %v907_v31 = vadd.f32 %v906_v30, %v817_v27 }
 0x1ec   : > { %v1152_v32 = vadd.f32 %v1082_v28, %v444_v25  ;;  %v457_v25 = vld [vmem:[#allocation2 + $0x198] sm:$0xff] }
 0x1ed   : > { %v1153_v33 = vadd.f32 %v907_v31, %v445_v29  ;;  %v458_v31 = vld [vmem:[#allocation2 + $0x38] sm:$0xff] }
 0x1ee   : > { %1216 = vst [vmem:[#allocation2 + $0x78] sm:$0xff] %v1152_v32 }
 0x1ef   : > { %1217 = vst [vmem:[#allocation2 + $0x70] sm:$0xff] %v1153_v33 }
 0x1f0   : > { %v995_v34 = vpop.f32.mrf.mxu2 }
 0x1f1   : > { %v1084_v36 = vpop.f32.mrf.mxu3  ;;  %v819_v37 = vpop.f32.mrf.mxu0 }
 0x1f2   : > { %v1085_v38 = vadd.f32 %v1084_v36, %v995_v34  ;;  %v908_v40 = vpop.f32.mrf.mxu1 }
 0x1f3   : > { %v909_v41 = vadd.f32 %v908_v40, %v819_v37 }
 0x1f4   : > { %v1154_v42 = vadd.f32 %v1085_v38, %v446_v35  ;;  %v459_v35 = vld [vmem:[#allocation2 + $0xc0] sm:$0xff] }
 0x1f5   : > { %v1155_v43 = vadd.f32 %v909_v41, %v447_v39  ;;  %v460_v41 = vld [vmem:[#allocation2 + $0x1c0] sm:$0xff] }
 0x1f6   : > { %1218 = vst [vmem:[#allocation2 + $0x90] sm:$0xff] %v1154_v42 }
 0x1f7   : > { %1219 = vst [vmem:[#allocation2 + $0x1d8] sm:$0xff] %v1155_v43 }
 0x1f8   : > { %v997_v44 = vpop.f32.mrf.mxu2 }
 0x1f9   : > { %v1086_v46 = vpop.f32.mrf.mxu3  ;;  %v822_v47 = vpop.f32.mrf.mxu0 }
 0x1fa   : > { %v1087_v48 = vadd.f32 %v1086_v46, %v997_v44  ;;  %v911_v50 = vpop.f32.mrf.mxu1 }
 0x1fb   : > { %v912_v51 = vadd.f32 %v911_v50, %v822_v47 }
 0x1fc   : > { %v1156_v52 = vadd.f32 %v1087_v48, %v448_v45  ;;  %v461_v45 = vld [vmem:[#allocation2 + $0x158] sm:$0xff] }
 0x1fd   : > { %v1157_v53 = vadd.f32 %v912_v51, %v449_v49  ;;  %v462_v51 = vld [vmem:[#allocation2 + $0x10] sm:$0xff] }
 0x1fe   : > { %1220 = vst [vmem:[#allocation2 + $0xd0] sm:$0xff] %v1156_v52 }
 0x1ff   : > { %1221 = vst [vmem:[#allocation2 + $0xb8] sm:$0xff] %v1157_v53 }
 0x200   : > { %v1000_v54 = vpop.f32.mrf.mxu2 }
 0x201   : > { %v1089_v56 = vpop.f32.mrf.mxu3  ;;  %v824_v57 = vpop.f32.mrf.mxu0 }
 0x202   : > { %v1090_v58 = vadd.f32 %v1089_v56, %v1000_v54  ;;  %v913_v60 = vpop.f32.mrf.mxu1 }
 0x203   : > { %v914_v61 = vadd.f32 %v913_v60, %v824_v57 }
 0x204   : > { %v1158_v62 = vadd.f32 %v1090_v58, %v450_v55  ;;  %v463_v55 = vld [vmem:[#allocation2 + $0x58] sm:$0xff] }
 0x205   : > { %v1159_v63 = vadd.f32 %v914_v61, %v451_v59  ;;  %v464_v61 = vld [vmem:[#allocation2 + $0xa0] sm:$0xff] }
 0x206   : > { %1222 = vst [vmem:[#allocation2 + $0x88] sm:$0xff] %v1158_v62 }
 0x207   : > { %1223 = vst [vmem:[#allocation2 + $0xa8] sm:$0xff] %v1159_v63 }
 0x208   : > { %v1002_v0 = vpop.f32.mrf.mxu2 }
 0x209   : > { %v1091_v2 = vpop.f32.mrf.mxu3  ;;  %v827_v3 = vpop.f32.mrf.mxu0 }
 0x20a   : > { %v1092_v4 = vadd.f32 %v1091_v2, %v1002_v0  ;;  %v916_v6 = vpop.f32.mrf.mxu1 }
 0x20b   : > { %v917_v7 = vadd.f32 %v916_v6, %v827_v3 }
 0x20c   : > { %v1160_v8 = vadd.f32 %v1092_v4, %v452_v1 }
 0x20d   : > { %v1161_v9 = vadd.f32 %v917_v7, %v453_v5 }
 0x20e   : > { %1224 = vst [vmem:[#allocation2 + $0x1c8] sm:$0xff] %v1160_v8 }
 0x20f   : > { %1225 = vst [vmem:[#allocation2 + $0x170] sm:$0xff] %v1161_v9 }
 0x210   : > { %v1005_v10 = vpop.f32.mrf.mxu2 }
 0x211   : > { %v1094_v12 = vpop.f32.mrf.mxu3  ;;  %v829_v13 = vpop.f32.mrf.mxu0 }
 0x212   : > { %v1095_v14 = vadd.f32 %v1094_v12, %v1005_v10  ;;  %v918_v16 = vpop.f32.mrf.mxu1 }
 0x213   : > { %v919_v17 = vadd.f32 %v918_v16, %v829_v13 }
 0x214   : > { %v1162_v18 = vadd.f32 %v1095_v14, %v454_v11 }
 0x215   : > { %v1163_v19 = vadd.f32 %v919_v17, %v455_v15 }
 0x216   : > { %1226 = vst [vmem:[#allocation2 + $0x178] sm:$0xff] %v1162_v18 }
 0x217   : > { %1227 = vst [vmem:[#allocation2 + $0x68] sm:$0xff] %v1163_v19 }
 0x218   : > { %v1007_v20 = vpop.f32.mrf.mxu2 }
 0x219   : > { %v1096_v22 = vpop.f32.mrf.mxu3  ;;  %v832_v23 = vpop.f32.mrf.mxu0 }
 0x21a   : > { %v1097_v24 = vadd.f32 %v1096_v22, %v1007_v20  ;;  %v921_v26 = vpop.f32.mrf.mxu1 }
 0x21b   : > { %v922_v27 = vadd.f32 %v921_v26, %v832_v23 }
 0x21c   : > { %v1164_v28 = vadd.f32 %v1097_v24, %v456_v21 }
 0x21d   : > { %v1165_v29 = vadd.f32 %v922_v27, %v457_v25 }
 0x21e   : > { %1228 = vst [vmem:[#allocation2 + $0x190] sm:$0xff] %v1164_v28 }
 0x21f   : > { %1229 = vst [vmem:[#allocation2 + $0x198] sm:$0xff] %v1165_v29 }
 0x220   : > { %v1010_v30 = vpop.f32.mrf.mxu2 }
 0x221   : > { %v1099_v32 = vpop.f32.mrf.mxu3  ;;  %v834_v33 = vpop.f32.mrf.mxu0 }
 0x222   : > { %v1100_v34 = vadd.f32 %v1099_v32, %v1010_v30  ;;  %v923_v36 = vpop.f32.mrf.mxu1 }
 0x223   : > { %v924_v37 = vadd.f32 %v923_v36, %v834_v33 }
 0x224   : > { %v1166_v38 = vadd.f32 %v1100_v34, %v458_v31 }
 0x225   : > { %v1167_v39 = vadd.f32 %v924_v37, %v459_v35 }
 0x226   : > { %1230 = vst [vmem:[#allocation2 + $0x38] sm:$0xff] %v1166_v38 }
 0x227   : > { %1231 = vst [vmem:[#allocation2 + $0xc0] sm:$0xff] %v1167_v39 }
 0x228   : > { %v1012_v40 = vpop.f32.mrf.mxu2 }
 0x229   : > { %v1101_v42 = vpop.f32.mrf.mxu3  ;;  %v837_v43 = vpop.f32.mrf.mxu0 }
 0x22a   : > { %v1102_v44 = vadd.f32 %v1101_v42, %v1012_v40  ;;  %v926_v46 = vpop.f32.mrf.mxu1 }
 0x22b   : > { %v927_v47 = vadd.f32 %v926_v46, %v837_v43 }
 0x22c   : > { %v1168_v48 = vadd.f32 %v1102_v44, %v460_v41 }
 0x22d   : > { %v1169_v49 = vadd.f32 %v927_v47, %v461_v45 }
 0x22e   : > { %1232 = vst [vmem:[#allocation2 + $0x1c0] sm:$0xff] %v1168_v48 }
 0x22f   : > { %1233 = vst [vmem:[#allocation2 + $0x158] sm:$0xff] %v1169_v49 }
 0x230   : > { %v1015_v50 = vpop.f32.mrf.mxu2 }
 0x231   : > { %v1104_v52 = vpop.f32.mrf.mxu3  ;;  %v839_v53 = vpop.f32.mrf.mxu0 }
 0x232   : > { %v1105_v54 = vadd.f32 %v1104_v52, %v1015_v50  ;;  %v928_v56 = vpop.f32.mrf.mxu1 }
 0x233   : > { %v929_v57 = vadd.f32 %v928_v56, %v839_v53 }
 0x234   : > { %v1170_v58 = vadd.f32 %v1105_v54, %v462_v51 }
 0x235   : > { %v1171_v59 = vadd.f32 %v929_v57, %v463_v55 }
 0x236   : > { %1234 = vst [vmem:[#allocation2 + $0x10] sm:$0xff] %v1170_v58 }
 0x237   : > { %1235 = vst [vmem:[#allocation2 + $0x58] sm:$0xff] %v1171_v59 }
 0x238   : > { %v1017_v60 = vpop.f32.mrf.mxu2 }
 0x239   : > { %v1106_v62 = vpop.f32.mrf.mxu3 }
 0x23a   : > { %v1107_v63 = vadd.f32 %v1106_v62, %v1017_v60  ;;  %1240 = sbr.rel (%p2155_p0) target bundleno = 783 (0x30f), region = 56 }
 0x23c   : > { %v1172_v0 = vadd.f32 %v1107_v63, %v464_v61 }
 0x23e   : > { %1236 = vst [vmem:[#allocation2 + $0xa0] sm:$0xff] %v1172_v0 }
 0x23f   : > { %v1309_v1 = vld [vmem:[%s3363_s2 + $0x20] sm:$0xff]  ;;  %v1307_v2 = vld [vmem:[%s3363_s2 + $0x10] sm:$0xff]  ;;  %v2644_v4 = vmov 0   ;;  %v1310_v5 = vld [vmem:[%s3363_s2 + $0x28] sm:$0xff] }
 0x240   : > { %v1305_v3 = vld [vmem:[%s3363_s2] sm:$0xff]  ;;  %2359 = vset.pattern.permute.xlu2 %v2644_v4  ;;  %2358 = vset.pattern.permute.xlu1 %v2644_v4  ;;  %v1308_v6 = vld [vmem:[%s3363_s2 + $0x18] sm:$0xff]  ;;  %v1306_v7 = vld [vmem:[%s3363_s2 + $0x8] sm:$0xff] }
 0x241   : > { %2357 = vset.pattern.permute.xlu0 %v2644_v4  ;;  %1359 = vperm.xlu2 %2359, %v1309_v1   ;;  %v1313_v8 = vld [vmem:[%s3363_s2 + $0x40] sm:$0xff]  ;;  %v1312_v9 = vld [vmem:[%s3363_s2 + $0x38] sm:$0xff]  ;;  %v1311_v10 = vld [vmem:[%s3363_s2 + $0x30] sm:$0xff] }
 0x242   : > { %1349 = vperm.xlu1 %2358, %v1307_v2   ;;  %1339 = vperm.xlu0 %2357, %v1305_v3   ;;  %v1316_v11 = vld [vmem:[%s3363_s2 + $0x58] sm:$0xff]  ;;  %v1315_v12 = vld [vmem:[%s3363_s2 + $0x50] sm:$0xff]  ;;  %v1314_v13 = vld [vmem:[%s3363_s2 + $0x48] sm:$0xff] }
 0x243   : > { %v1319_v14 = vld [vmem:[%s3363_s2 + $0x70] sm:$0xff]  ;;  %v1318_v15 = vld [vmem:[%s3363_s2 + $0x68] sm:$0xff]  ;;  %v1317_v16 = vld [vmem:[%s3363_s2 + $0x60] sm:$0xff] }
 0x244   : > { %v1322_v17 = vld [vmem:[%s3363_s2 + $0x88] sm:$0xff]  ;;  %v1321_v18 = vld [vmem:[%s3363_s2 + $0x80] sm:$0xff]  ;;  %v1320_v19 = vld [vmem:[%s3363_s2 + $0x78] sm:$0xff] }
 0x245   : > { %v1325_v20 = vld [vmem:[%s3363_s2 + $0xa0] sm:$0xff]  ;;  %v1324_v21 = vld [vmem:[%s3363_s2 + $0x98] sm:$0xff]  ;;  %v1323_v22 = vld [vmem:[%s3363_s2 + $0x90] sm:$0xff] }
 0x246   : > { %v1328_v23 = vld [vmem:[%s3363_s2 + $0xb8] sm:$0xff]  ;;  %v1327_v24 = vld [vmem:[%s3363_s2 + $0xb0] sm:$0xff]  ;;  %v1326_v25 = vld [vmem:[%s3363_s2 + $0xa8] sm:$0xff] }
 0x247   : > { %v1331_v26 = vld [vmem:[%s3363_s2 + $0xd0] sm:$0xff]  ;;  %v1330_v27 = vld [vmem:[%s3363_s2 + $0xc8] sm:$0xff]  ;;  %v1329_v28 = vld [vmem:[%s3363_s2 + $0xc0] sm:$0xff] }
 0x248   : > { %v1334_v29 = vld [vmem:[%s3363_s2 + $0xe8] sm:$0xff]  ;;  %v1333_v30 = vld [vmem:[%s3363_s2 + $0xe0] sm:$0xff]  ;;  %v1332_v31 = vld [vmem:[%s3363_s2 + $0xd8] sm:$0xff] }
 0x249   : > { %1364 = vperm.xlu2 %2359, %v1310_v5   ;;  %v1336_v32 = vld [vmem:[%s3363_s2 + $0xf8] sm:$0xff]  ;;  %v1335_v33 = vld [vmem:[%s3363_s2 + $0xf0] sm:$0xff]  ;;  %v1249_v34 = vld [vmem:[#allocation2 + $0x180] sm:$0xff] }
 0x24a   : > { %1354 = vperm.xlu1 %2358, %v1308_v6   ;;  %1344 = vperm.xlu0 %2357, %v1306_v7   ;;  %v1250_v35 = vld [vmem:[#allocation2 + $0x110] sm:$0xff]  ;;  %v1569_v36 = vld [vmem:[#allocation8 + $0x40] sm:$0xff]  ;;  %v1570_v37 = vld [vmem:[#allocation8 + $0x48] sm:$0xff] }
 0x24b   : > { %v1251_v44 = vld [vmem:[#allocation2 + $0x118] sm:$0xff]  ;;  %v1571_v46 = vld [vmem:[#allocation8 + $0x50] sm:$0xff]  ;;  %v1257_v54 = vld [vmem:[#allocation2 + $0xe0] sm:$0xff] }
 0x24c   : > { %v1252_v45 = vld [vmem:[#allocation2 + $0x98] sm:$0xff]  ;;  %v1258_v55 = vld [vmem:[#allocation2 + $0x188] sm:$0xff]  ;;  %v1577_v56 = vld [vmem:[#allocation8 + $0x80] sm:$0xff] }
 0x24d   : > { %v1572_v47 = vld [vmem:[#allocation8 + $0x58] sm:$0xff]  ;;  %v1578_v57 = vld [vmem:[#allocation8 + $0x88] sm:$0xff]  ;;  %v1245_v2 = vld [vmem:[#allocation2 + $0x50] sm:$0xff] }
 0x24e   : > { %v1263_v0 = vld [vmem:[#allocation2 + $0x1b8] sm:$0xff]  ;;  %v1264_v1 = vld [vmem:[#allocation2 + $0x28] sm:$0xff]  ;;  %v1241_v4 = vld [vmem:[#allocation2 + $0xb0] sm:$0xff] }
 0x24f   : > { %v1246_v3 = vld [vmem:[#allocation2 + $0x168] sm:$0xff]  ;;  %v1242_v5 = vld [vmem:[#allocation2 + $0x1b0] sm:$0xff]  ;;  %v1584_v7 = vld [vmem:[#allocation8 + $0xb8] sm:$0xff] }
 0x250   : > { %v1583_v6 = vld [vmem:[#allocation8 + $0xb0] sm:$0xff] }
 0x251   : > { %1379 = vperm.xlu2 %2359, %v1313_v8  }
 0x252   : > { %1374 = vperm.xlu1 %2358, %v1312_v9   ;;  %1369 = vperm.xlu0 %2357, %v1311_v10  }
 0x259   : > { %1394 = vperm.xlu2 %2359, %v1316_v11   ;;  %v1565_v11 = vld [vmem:[#allocation8 + $0x20] sm:$0xff] }
 0x25a   : > { %1389 = vperm.xlu1 %2358, %v1315_v12   ;;  %1384 = vperm.xlu0 %2357, %v1314_v13   ;;  %v1566_v12 = vld [vmem:[#allocation8 + $0x28] sm:$0xff] }
 0x261   : > { %1409 = vperm.xlu2 %2359, %v1319_v14  }
 0x262   : > { %1404 = vperm.xlu1 %2358, %v1318_v15   ;;  %1399 = vperm.xlu0 %2357, %v1317_v16  }
 0x269   : > { %1424 = vperm.xlu2 %2359, %v1322_v17   ;;  %v1561_v17 = vld [vmem:[#allocation8] sm:$0xff] }
 0x26a   : > { %1419 = vperm.xlu1 %2358, %v1321_v18   ;;  %1414 = vperm.xlu0 %2357, %v1320_v19   ;;  %v1562_v18 = vld [vmem:[#allocation8 + $0x8] sm:$0xff] }
 0x271   : > { %1439 = vperm.xlu2 %2359, %v1325_v20  }
 0x272   : > { %1434 = vperm.xlu1 %2358, %v1324_v21   ;;  %1429 = vperm.xlu0 %2357, %v1323_v22  }
 0x279   : > { %1454 = vperm.xlu2 %2359, %v1328_v23  }
 0x27a   : > { %1449 = vperm.xlu1 %2358, %v1327_v24   ;;  %1444 = vperm.xlu0 %2357, %v1326_v25  }
 0x281   : > { %1469 = vperm.xlu2 %2359, %v1331_v26  }
 0x282   : > { %1464 = vperm.xlu1 %2358, %v1330_v27   ;;  %1459 = vperm.xlu0 %2357, %v1329_v28  }
 0x289   : > { %1484 = vperm.xlu2 %2359, %v1334_v29   ;;  %v1269_v29 = vld [vmem:[#allocation2 + $0x1e0] sm:$0xff] }
 0x28a   : > { %1479 = vperm.xlu1 %2358, %v1333_v30   ;;  %1474 = vperm.xlu0 %2357, %v1332_v31   ;;  %v1270_v30 = vld [vmem:[#allocation2] sm:$0xff]  ;;  %v1247_v31 = vld [vmem:[#allocation2 + $0x130] sm:$0xff] }
 0x292   : > { %1494 = vperm.xlu1 %2358, %v1336_v32   ;;  %1489 = vperm.xlu0 %2357, %v1335_v33   ;;  %v1248_v32 = vld [vmem:[#allocation2 + $0x48] sm:$0xff]  ;;  %v1243_v33 = vld [vmem:[#allocation2 + $0xd8] sm:$0xff] }
 0x29b   : > { %v1360_v38 = vpop.permute.xlu2 %1359 }
 0x29c   : > { %v1505_v39 = vadd.f32 %v1360_v38, %v1249_v34  ;;  %v1506_v40 = vadd.f32 %v1360_v38, %v1250_v35  ;;  %v1244_v34 = vld [vmem:[#allocation2 + $0x18] sm:$0xff]  ;;  %v1589_v35 = vld [vmem:[#allocation8 + $0xe0] sm:$0xff] }
 0x29e   : > { %v1633_v41 = vadd.f32 %v1569_v36, %v1505_v39  ;;  %v1634_v42 = vadd.f32 %v1570_v37, %v1506_v40  ;;  %v1590_v36 = vld [vmem:[#allocation8 + $0xe8] sm:$0xff] }
 0x2a0   : > { %1697 = vst [vmem:[%s2887_s11 + $0x40] sm:$0xff] %v1633_v41  ;;  %v1757_v43 = vpack.c.bf16 %v1634_v42, %v1633_v41  ;;  %v1567_v41 = vld [vmem:[#allocation8 + $0x30] sm:$0xff] }
 0x2a1   : > { %1698 = vst [vmem:[%s2887_s11 + $0x48] sm:$0xff] %v1634_v42  ;;  %v1568_v42 = vld [vmem:[#allocation8 + $0x38] sm:$0xff] }
 0x2a2   : > { %1789 = vst [vmem:[%s2889_s13 + $0x20] sm:$0xff] %v1757_v43 }
 0x2a3   : > { %v1365_v48 = vpop.permute.xlu2 %1364 }
 0x2a4   : > { %v1507_v49 = vadd.f32 %v1365_v48, %v1251_v44  ;;  %v1508_v50 = vadd.f32 %v1365_v48, %v1252_v45 }
 0x2a6   : > { %v1635_v51 = vadd.f32 %v1571_v46, %v1507_v49  ;;  %v1636_v52 = vadd.f32 %v1572_v47, %v1508_v50 }
 0x2a8   : > { %1699 = vst [vmem:[%s2887_s11 + $0x50] sm:$0xff] %v1635_v51  ;;  %v1758_v53 = vpack.c.bf16 %v1636_v52, %v1635_v51  ;;  %v1563_v51 = vld [vmem:[#allocation8 + $0x10] sm:$0xff] }
 0x2a9   : > { %1700 = vst [vmem:[%s2887_s11 + $0x58] sm:$0xff] %v1636_v52  ;;  %v1564_v52 = vld [vmem:[#allocation8 + $0x18] sm:$0xff] }
 0x2aa   : > { %1790 = vst [vmem:[%s2889_s13 + $0x28] sm:$0xff] %v1758_v53 }
 0x2ab   : > { %v1380_v58 = vpop.permute.xlu2 %1379 }
 0x2ac   : > { %v1513_v59 = vadd.f32 %v1380_v58, %v1257_v54  ;;  %v1514_v60 = vadd.f32 %v1380_v58, %v1258_v55  ;;  %v1275_v58 = vld [vmem:[#allocation2 + $0x100] sm:$0xff] }
 0x2ae   : > { %v1641_v61 = vadd.f32 %v1577_v56, %v1513_v59  ;;  %v1642_v62 = vadd.f32 %v1578_v57, %v1514_v60  ;;  %v1276_v59 = vld [vmem:[#allocation2 + $0xc8] sm:$0xff] }
 0x2b0   : > { %1705 = vst [vmem:[%s2887_s11 + $0x80] sm:$0xff] %v1641_v61  ;;  %v1761_v63 = vpack.c.bf16 %v1642_v62, %v1641_v61  ;;  %v1595_v61 = vld [vmem:[#allocation8 + $0x110] sm:$0xff] }
 0x2b1   : > { %1706 = vst [vmem:[%s2887_s11 + $0x88] sm:$0xff] %v1642_v62  ;;  %v1255_v62 = vld [vmem:[#allocation2 + $0x108] sm:$0xff] }
 0x2b2   : > { %1793 = vst [vmem:[%s2889_s13 + $0x40] sm:$0xff] %v1761_v63  ;;  %v1256_v63 = vld [vmem:[#allocation2 + $0x60] sm:$0xff] }
 0x2b3   : > { %v1395_v8 = vpop.permute.xlu2 %1394 }
 0x2b4   : > { %v1519_v9 = vadd.f32 %v1395_v8, %v1263_v0  ;;  %v1520_v10 = vadd.f32 %v1395_v8, %v1264_v1  ;;  %v1350_v13 = vpop.permute.xlu1 %1349  ;;  %v1340_v14 = vpop.permute.xlu0 %1339  ;;  %v1596_v0 = vld [vmem:[#allocation8 + $0x118] sm:$0xff] }
 0x2b5   : > { %v1501_v15 = vadd.f32 %v1350_v13, %v1245_v2  ;;  %v1502_v16 = vadd.f32 %v1350_v13, %v1246_v3  ;;  %v1497_v19 = vadd.f32 %v1340_v14, %v1241_v4  ;;  %v1498_v20 = vadd.f32 %v1340_v14, %v1242_v5  ;;  %v1253_v2 = vld [vmem:[#allocation2 + $0x120] sm:$0xff]  ;;  %v1254_v3 = vld [vmem:[#allocation2 + $0x150] sm:$0xff] }
 0x2b6   : > { %v1647_v21 = vadd.f32 %v1583_v6, %v1519_v9  ;;  %v1648_v22 = vadd.f32 %v1584_v7, %v1520_v10  ;;  %v1575_v6 = vld [vmem:[#allocation8 + $0x70] sm:$0xff]  ;;  %v1576_v7 = vld [vmem:[#allocation8 + $0x78] sm:$0xff] }
 0x2b7   : > { %v1629_v23 = vadd.f32 %v1565_v11, %v1501_v15  ;;  %v1630_v24 = vadd.f32 %v1566_v12, %v1502_v16  ;;  %v1625_v26 = vadd.f32 %v1561_v17, %v1497_v19  ;;  %v1626_v27 = vadd.f32 %v1562_v18, %v1498_v20  ;;  %v1573_v19 = vld [vmem:[#allocation8 + $0x60] sm:$0xff]  ;;  %v1574_v20 = vld [vmem:[#allocation8 + $0x68] sm:$0xff] }
 0x2b8   : > { %1711 = vst [vmem:[%s2887_s11 + $0xb0] sm:$0xff] %v1647_v21  ;;  %v1764_v25 = vpack.c.bf16 %v1648_v22, %v1647_v21 }
 0x2b9   : > { %1712 = vst [vmem:[%s2887_s11 + $0xb8] sm:$0xff] %v1648_v22  ;;  %v1755_v28 = vpack.c.bf16 %v1630_v24, %v1629_v23  ;;  %v1753_v38 = vpack.c.bf16 %v1626_v27, %v1625_v26  ;;  %v1281_v22 = vld [vmem:[#allocation2 + $0x1a0] sm:$0xff] }
 0x2ba   : > { %1796 = vst [vmem:[%s2889_s13 + $0x58] sm:$0xff] %v1764_v25 }
 0x2bb   : > { %1693 = vst [vmem:[%s2887_s11 + $0x20] sm:$0xff] %v1629_v23  ;;  %v1410_v37 = vpop.permute.xlu2 %1409  ;;  %v1282_v23 = vld [vmem:[#allocation2 + $0x1f0] sm:$0xff] }
 0x2bc   : > { %1694 = vst [vmem:[%s2887_s11 + $0x28] sm:$0xff] %v1630_v24  ;;  %v1525_v39 = vadd.f32 %v1410_v37, %v1269_v29  ;;  %v1526_v40 = vadd.f32 %v1410_v37, %v1270_v30  ;;  %v1355_v43 = vpop.permute.xlu1 %1354  ;;  %v1345_v44 = vpop.permute.xlu0 %1344  ;;  %v1601_v29 = vld [vmem:[#allocation8 + $0x140] sm:$0xff]  ;;  %v1602_v30 = vld [vmem:[#allocation8 + $0x148] sm:$0xff] }
 0x2bd   : > { %1787 = vst [vmem:[%s2889_s13 + $0x10] sm:$0xff] %v1755_v28  ;;  %v1503_v45 = vadd.f32 %v1355_v43, %v1247_v31  ;;  %v1504_v46 = vadd.f32 %v1355_v43, %v1248_v32  ;;  %v1499_v47 = vadd.f32 %v1345_v44, %v1243_v33  ;;  %v1500_v48 = vadd.f32 %v1345_v44, %v1244_v34  ;;  %v1260_v37 = vld [vmem:[#allocation2 + $0x140] sm:$0xff] }
 0x2be   : > { %1689 = vst [vmem:[%s2887_s11] sm:$0xff] %v1625_v26  ;;  %v1653_v49 = vadd.f32 %v1589_v35, %v1525_v39  ;;  %v1654_v50 = vadd.f32 %v1590_v36, %v1526_v40  ;;  %v1261_v26 = vld [vmem:[#allocation2 + $0x80] sm:$0xff]  ;;  %v1259_v36 = vld [vmem:[#allocation2 + $0x138] sm:$0xff]  ;;  %v1582_v39 = vld [vmem:[#allocation8 + $0xa8] sm:$0xff] }
 0x2bf   : > { %1690 = vst [vmem:[%s2887_s11 + $0x8] sm:$0xff] %v1626_v27  ;;  %v1631_v53 = vadd.f32 %v1567_v41, %v1503_v45  ;;  %v1632_v54 = vadd.f32 %v1568_v42, %v1504_v46  ;;  %v1627_v56 = vadd.f32 %v1563_v51, %v1499_v47  ;;  %v1628_v57 = vadd.f32 %v1564_v52, %v1500_v48  ;;  %v1262_v27 = vld [vmem:[#allocation2 + $0x1a8] sm:$0xff]  ;;  %v1287_v52 = vld [vmem:[#allocation2 + $0x1d8] sm:$0xff] }
 0x2c0   : > { %1785 = vst [vmem:[%s2889_s13] sm:$0xff] %v1753_v38  ;;  %v1767_v55 = vpack.c.bf16 %v1654_v50, %v1653_v49  ;;  %v1581_v38 = vld [vmem:[#allocation8 + $0xa0] sm:$0xff] }
 0x2c1   : > { %1717 = vst [vmem:[%s2887_s11 + $0xe0] sm:$0xff] %v1653_v49  ;;  %v1756_v60 = vpack.c.bf16 %v1632_v54, %v1631_v53  ;;  %v1754_v10 = vpack.c.bf16 %v1628_v57, %v1627_v56  ;;  %v1579_v49 = vld [vmem:[#allocation8 + $0x90] sm:$0xff] }
 0x2c2   : > { %1718 = vst [vmem:[%s2887_s11 + $0xe8] sm:$0xff] %v1654_v50  ;;  %v1580_v50 = vld [vmem:[#allocation8 + $0x98] sm:$0xff] }
 0x2c3   : > { %1799 = vst [vmem:[%s2889_s13 + $0x70] sm:$0xff] %v1767_v55  ;;  %v1425_v1 = vpop.permute.xlu2 %1424  ;;  %v1268_v55 = vld [vmem:[#allocation2 + $0x30] sm:$0xff] }
 0x2c4   : > { %1695 = vst [vmem:[%s2887_s11 + $0x30] sm:$0xff] %v1631_v53  ;;  %v1531_v4 = vadd.f32 %v1425_v1, %v1275_v58  ;;  %v1532_v5 = vadd.f32 %v1425_v1, %v1276_v59  ;;  %v1375_v8 = vpop.permute.xlu1 %1374  ;;  %v1370_v9 = vpop.permute.xlu0 %1369  ;;  %v1288_v53 = vld [vmem:[#allocation2 + $0xd0] sm:$0xff]  ;;  %v1608_v59 = vld [vmem:[#allocation8 + $0x178] sm:$0xff] }
 0x2c5   : > { %1696 = vst [vmem:[%s2887_s11 + $0x38] sm:$0xff] %v1632_v54  ;;  %v1511_v11 = vadd.f32 %v1375_v8, %v1255_v62  ;;  %v1512_v12 = vadd.f32 %v1375_v8, %v1256_v63  ;;  %v1509_v15 = vadd.f32 %v1370_v9, %v1253_v2  ;;  %v1510_v16 = vadd.f32 %v1370_v9, %v1254_v3  ;;  %v1267_v54 = vld [vmem:[#allocation2 + $0x160] sm:$0xff]  ;;  %v1607_v58 = vld [vmem:[#allocation8 + $0x170] sm:$0xff]  ;;  %v1588_v9 = vld [vmem:[#allocation8 + $0xd8] sm:$0xff] }
 0x2c6   : > { %1788 = vst [vmem:[%s2889_s13 + $0x18] sm:$0xff] %v1756_v60  ;;  %v1659_v13 = vadd.f32 %v1595_v61, %v1531_v4  ;;  %v1660_v14 = vadd.f32 %v1596_v0, %v1532_v5  ;;  %v1265_v4 = vld [vmem:[#allocation2 + $0x1e8] sm:$0xff]  ;;  %v1266_v5 = vld [vmem:[#allocation2 + $0xf8] sm:$0xff]  ;;  %v1587_v8 = vld [vmem:[#allocation8 + $0xd0] sm:$0xff] }
 0x2c7   : > { %1691 = vst [vmem:[%s2887_s11 + $0x10] sm:$0xff] %v1627_v56  ;;  %v1639_v17 = vadd.f32 %v1575_v6, %v1511_v11  ;;  %v1640_v18 = vadd.f32 %v1576_v7, %v1512_v12  ;;  %v1637_v24 = vadd.f32 %v1573_v19, %v1509_v15  ;;  %v1638_v25 = vadd.f32 %v1574_v20, %v1510_v16  ;;  %v1585_v11 = vld [vmem:[#allocation8 + $0xc0] sm:$0xff]  ;;  %v1586_v16 = vld [vmem:[#allocation8 + $0xc8] sm:$0xff] }
 0x2c8   : > { %1692 = vst [vmem:[%s2887_s11 + $0x18] sm:$0xff] %v1628_v57  ;;  %v1770_v21 = vpack.c.bf16 %v1660_v14, %v1659_v13 }
 0x2c9   : > { %1786 = vst [vmem:[%s2889_s13 + $0x8] sm:$0xff] %v1754_v10  ;;  %v1760_v28 = vpack.c.bf16 %v1640_v18, %v1639_v17  ;;  %v1759_v42 = vpack.c.bf16 %v1638_v25, %v1637_v24 }
 0x2ca   : > { %1723 = vst [vmem:[%s2887_s11 + $0x110] sm:$0xff] %v1659_v13 }
 0x2cb   : > { %1724 = vst [vmem:[%s2887_s11 + $0x118] sm:$0xff] %v1660_v14  ;;  %v1440_v31 = vpop.permute.xlu2 %1439 }
 0x2cc   : > { %1802 = vst [vmem:[%s2889_s13 + $0x88] sm:$0xff] %v1770_v21  ;;  %v1537_v32 = vadd.f32 %v1440_v31, %v1281_v22  ;;  %v1538_v33 = vadd.f32 %v1440_v31, %v1282_v23  ;;  %v1390_v34 = vpop.permute.xlu1 %1389  ;;  %v1385_v35 = vpop.permute.xlu0 %1384  ;;  %v1273_v21 = vld [vmem:[#allocation2 + $0x148] sm:$0xff]  ;;  %v1274_v22 = vld [vmem:[#allocation2 + $0x1d0] sm:$0xff] }
 0x2cd   : > { %1703 = vst [vmem:[%s2887_s11 + $0x70] sm:$0xff] %v1639_v17  ;;  %v1517_v40 = vadd.f32 %v1390_v34, %v1261_v26  ;;  %v1518_v41 = vadd.f32 %v1390_v34, %v1262_v27  ;;  %v1515_v45 = vadd.f32 %v1385_v35, %v1259_v36  ;;  %v1516_v46 = vadd.f32 %v1385_v35, %v1260_v37  ;;  %v1293_v17 = vld [vmem:[#allocation2 + $0x170] sm:$0xff]  ;;  %v1614_v26 = vld [vmem:[#allocation8 + $0x1a8] sm:$0xff] }
 0x2ce   : > { %1704 = vst [vmem:[%s2887_s11 + $0x78] sm:$0xff] %v1640_v18  ;;  %v1665_v43 = vadd.f32 %v1601_v29, %v1537_v32  ;;  %v1666_v44 = vadd.f32 %v1602_v30, %v1538_v33  ;;  %v1294_v18 = vld [vmem:[#allocation2 + $0x178] sm:$0xff]  ;;  %v1271_v34 = vld [vmem:[#allocation2 + $0xf0] sm:$0xff]  ;;  %v1272_v35 = vld [vmem:[#allocation2 + $0x8] sm:$0xff] }
 0x2cf   : > { %1792 = vst [vmem:[%s2889_s13 + $0x38] sm:$0xff] %v1760_v28  ;;  %v1645_v47 = vadd.f32 %v1581_v38, %v1517_v40  ;;  %v1646_v48 = vadd.f32 %v1582_v39, %v1518_v41  ;;  %v1643_v56 = vadd.f32 %v1579_v49, %v1515_v45  ;;  %v1644_v57 = vadd.f32 %v1580_v50, %v1516_v46  ;;  %v1593_v38 = vld [vmem:[#allocation8 + $0x100] sm:$0xff]  ;;  %v1594_v39 = vld [vmem:[#allocation8 + $0x108] sm:$0xff] }
 0x2d0   : > { %1701 = vst [vmem:[%s2887_s11 + $0x60] sm:$0xff] %v1637_v24  ;;  %v1773_v51 = vpack.c.bf16 %v1666_v44, %v1665_v43 }
 0x2d1   : > { %1702 = vst [vmem:[%s2887_s11 + $0x68] sm:$0xff] %v1638_v25  ;;  %v1763_v61 = vpack.c.bf16 %v1646_v48, %v1645_v47  ;;  %v1762_v10 = vpack.c.bf16 %v1644_v57, %v1643_v56  ;;  %v1613_v25 = vld [vmem:[#allocation8 + $0x1a0] sm:$0xff] }
 0x2d2   : > { %1791 = vst [vmem:[%s2889_s13 + $0x30] sm:$0xff] %v1759_v42 }
 0x2d3   : > { %1729 = vst [vmem:[%s2887_s11 + $0x140] sm:$0xff] %v1665_v43  ;;  %v1455_v60 = vpop.permute.xlu2 %1454  ;;  %v1299_v43 = vld [vmem:[#allocation2 + $0xc0] sm:$0xff] }
 0x2d4   : > { %1730 = vst [vmem:[%s2887_s11 + $0x148] sm:$0xff] %v1666_v44  ;;  %v1543_v62 = vadd.f32 %v1455_v60, %v1287_v52  ;;  %v1544_v63 = vadd.f32 %v1455_v60, %v1288_v53  ;;  %v1405_v0 = vpop.permute.xlu1 %1404  ;;  %v1400_v1 = vpop.permute.xlu0 %1399  ;;  %v1300_v44 = vld [vmem:[#allocation2 + $0x1c0] sm:$0xff]  ;;  %v1620_v60 = vld [vmem:[#allocation8 + $0x1d8] sm:$0xff] }
 0x2d5   : > { %1805 = vst [vmem:[%s2889_s13 + $0xa0] sm:$0xff] %v1773_v51  ;;  %v1523_v2 = vadd.f32 %v1405_v0, %v1267_v54  ;;  %v1524_v3 = vadd.f32 %v1405_v0, %v1268_v55  ;;  %v1521_v12 = vadd.f32 %v1400_v1, %v1265_v4  ;;  %v1522_v13 = vadd.f32 %v1400_v1, %v1266_v5  ;;  %v1279_v54 = vld [vmem:[#allocation2 + $0x20] sm:$0xff]  ;;  %v1280_v55 = vld [vmem:[#allocation2 + $0x128] sm:$0xff]  ;;  %v1278_v1 = vld [vmem:[#allocation2 + $0x1f8] sm:$0xff] }
 0x2d6   : > { %1709 = vst [vmem:[%s2887_s11 + $0xa0] sm:$0xff] %v1645_v47  ;;  %v1671_v6 = vadd.f32 %v1607_v58, %v1543_v62  ;;  %v1672_v7 = vadd.f32 %v1608_v59, %v1544_v63  ;;  %v1591_v47 = vld [vmem:[#allocation8 + $0xf0] sm:$0xff]  ;;  %v1277_v0 = vld [vmem:[#allocation2 + $0x40] sm:$0xff]  ;;  %v1600_v5 = vld [vmem:[#allocation8 + $0x138] sm:$0xff] }
 0x2d7   : > { %1710 = vst [vmem:[%s2887_s11 + $0xa8] sm:$0xff] %v1646_v48  ;;  %v1651_v14 = vadd.f32 %v1587_v8, %v1523_v2  ;;  %v1652_v15 = vadd.f32 %v1588_v9, %v1524_v3  ;;  %v1649_v23 = vadd.f32 %v1585_v11, %v1521_v12  ;;  %v1650_v24 = vadd.f32 %v1586_v16, %v1522_v13  ;;  %v1592_v48 = vld [vmem:[#allocation8 + $0xf8] sm:$0xff]  ;;  %v1619_v59 = vld [vmem:[#allocation8 + $0x1d0] sm:$0xff]  ;;  %v1597_v13 = vld [vmem:[#allocation8 + $0x120] sm:$0xff] }
 0x2d8   : > { %1795 = vst [vmem:[%s2889_s13 + $0x50] sm:$0xff] %v1763_v61  ;;  %v1776_v19 = vpack.c.bf16 %v1672_v7, %v1671_v6  ;;  %v1599_v4 = vld [vmem:[#allocation8 + $0x130] sm:$0xff] }
 0x2d9   : > { %1707 = vst [vmem:[%s2887_s11 + $0x90] sm:$0xff] %v1643_v56  ;;  %v1766_v31 = vpack.c.bf16 %v1652_v15, %v1651_v14  ;;  %v1765_v40 = vpack.c.bf16 %v1650_v24, %v1649_v23  ;;  %v1285_v9 = vld [vmem:[#allocation2 + $0x70] sm:$0xff] }
 0x2da   : > { %1708 = vst [vmem:[%s2887_s11 + $0x98] sm:$0xff] %v1644_v57 }
 0x2db   : > { %1794 = vst [vmem:[%s2889_s13 + $0x48] sm:$0xff] %v1762_v10  ;;  %v1470_v20 = vpop.permute.xlu2 %1469  ;;  %v1286_v10 = vld [vmem:[#allocation2 + $0x90] sm:$0xff] }
 0x2dc   : > { %1735 = vst [vmem:[%s2887_s11 + $0x170] sm:$0xff] %v1671_v6  ;;  %v1549_v27 = vadd.f32 %v1470_v20, %v1293_v17  ;;  %v1550_v28 = vadd.f32 %v1470_v20, %v1294_v18  ;;  %v1420_v29 = vpop.permute.xlu1 %1419  ;;  %v1415_v30 = vpop.permute.xlu0 %1414  ;;  %v1283_v20 = vld [vmem:[#allocation2 + $0xe8] sm:$0xff] }
 0x2dd   : > { %1736 = vst [vmem:[%s2887_s11 + $0x178] sm:$0xff] %v1672_v7  ;;  %v1529_v32 = vadd.f32 %v1420_v29, %v1273_v21  ;;  %v1530_v33 = vadd.f32 %v1420_v29, %v1274_v22  ;;  %v1527_v41 = vadd.f32 %v1415_v30, %v1271_v34  ;;  %v1528_v42 = vadd.f32 %v1415_v30, %v1272_v35  ;;  %v1284_v21 = vld [vmem:[#allocation2 + $0x78] sm:$0xff]  ;;  %v1291_v34 = vld [vmem:[#allocation2 + $0xa8] sm:$0xff] }
 0x2de   : > { %1808 = vst [vmem:[%s2889_s13 + $0xb8] sm:$0xff] %v1776_v19  ;;  %v1677_v36 = vadd.f32 %v1613_v25, %v1549_v27  ;;  %v1678_v37 = vadd.f32 %v1614_v26, %v1550_v28  ;;  %v1606_v25 = vld [vmem:[#allocation8 + $0x168] sm:$0xff] }
 0x2df   : > { %1715 = vst [vmem:[%s2887_s11 + $0xd0] sm:$0xff] %v1651_v14  ;;  %v1657_v45 = vadd.f32 %v1593_v38, %v1529_v32  ;;  %v1658_v46 = vadd.f32 %v1594_v39, %v1530_v33  ;;  %v1655_v57 = vadd.f32 %v1591_v47, %v1527_v41  ;;  %v1656_v58 = vadd.f32 %v1592_v48, %v1528_v42  ;;  %v1598_v14 = vld [vmem:[#allocation8 + $0x128] sm:$0xff]  ;;  %v1604_v32 = vld [vmem:[#allocation8 + $0x158] sm:$0xff] }
 0x2e0   : > { %1716 = vst [vmem:[%s2887_s11 + $0xd8] sm:$0xff] %v1652_v15  ;;  %v1779_v49 = vpack.c.bf16 %v1678_v37, %v1677_v36  ;;  %v1292_v35 = vld [vmem:[#allocation2 + $0x1c8] sm:$0xff]  ;;  %v1612_v41 = vld [vmem:[#allocation8 + $0x198] sm:$0xff] }
 0x2e1   : > { %1798 = vst [vmem:[%s2889_s13 + $0x68] sm:$0xff] %v1766_v31  ;;  %v1769_v61 = vpack.c.bf16 %v1658_v46, %v1657_v45  ;;  %v1768_v6 = vpack.c.bf16 %v1656_v58, %v1655_v57  ;;  %v1603_v31 = vld [vmem:[#allocation8 + $0x150] sm:$0xff] }
 0x2e2   : > { %1713 = vst [vmem:[%s2887_s11 + $0xc0] sm:$0xff] %v1649_v23 }
 0x2e3   : > { %1714 = vst [vmem:[%s2887_s11 + $0xc8] sm:$0xff] %v1650_v24  ;;  %v1485_v50 = vpop.permute.xlu2 %1484  ;;  %v1605_v24 = vld [vmem:[#allocation8 + $0x160] sm:$0xff] }
 0x2e4   : > { %1797 = vst [vmem:[%s2889_s13 + $0x60] sm:$0xff] %v1765_v40  ;;  %v1555_v51 = vadd.f32 %v1485_v50, %v1299_v43  ;;  %v1556_v52 = vadd.f32 %v1485_v50, %v1300_v44  ;;  %v1435_v53 = vpop.permute.xlu1 %1434  ;;  %v1430_v56 = vpop.permute.xlu0 %1429  ;;  %v1611_v40 = vld [vmem:[#allocation8 + $0x190] sm:$0xff] }
 0x2e5   : > { %1741 = vst [vmem:[%s2887_s11 + $0x1a0] sm:$0xff] %v1677_v36  ;;  %v1535_v62 = vadd.f32 %v1435_v53, %v1279_v54  ;;  %v1536_v63 = vadd.f32 %v1435_v53, %v1280_v55  ;;  %v1533_v7 = vadd.f32 %v1430_v56, %v1277_v0  ;;  %v1534_v8 = vadd.f32 %v1430_v56, %v1278_v1  ;;  %v1289_v36 = vld [vmem:[#allocation2 + $0xb8] sm:$0xff] }
 0x2e6   : > { %1742 = vst [vmem:[%s2887_s11 + $0x1a8] sm:$0xff] %v1678_v37  ;;  %v1683_v2 = vadd.f32 %v1619_v59, %v1555_v51  ;;  %v1684_v3 = vadd.f32 %v1620_v60, %v1556_v52  ;;  %v1290_v37 = vld [vmem:[#allocation2 + $0x88] sm:$0xff]  ;;  %v1609_v51 = vld [vmem:[#allocation8 + $0x180] sm:$0xff]  ;;  %v1297_v54 = vld [vmem:[#allocation2 + $0x198] sm:$0xff] }
 0x2e7   : > { %1811 = vst [vmem:[%s2889_s13 + $0xd0] sm:$0xff] %v1779_v49  ;;  %v1663_v11 = vadd.f32 %v1599_v4, %v1535_v62  ;;  %v1664_v12 = vadd.f32 %v1600_v5, %v1536_v63  ;;  %v1661_v22 = vadd.f32 %v1597_v13, %v1533_v7  ;;  %v1662_v23 = vadd.f32 %v1598_v14, %v1534_v8  ;;  %v1610_v52 = vld [vmem:[#allocation8 + $0x188] sm:$0xff]  ;;  %v1296_v59 = vld [vmem:[#allocation2 + $0x190] sm:$0xff]  ;;  %v1616_v4 = vld [vmem:[#allocation8 + $0x1b8] sm:$0xff] }
 0x2e8   : > { %1721 = vst [vmem:[%s2887_s11 + $0x100] sm:$0xff] %v1657_v45  ;;  %v1782_v15 = vpack.c.bf16 %v1684_v3, %v1683_v2  ;;  %v1618_v62 = vld [vmem:[#allocation8 + $0x1c8] sm:$0xff]  ;;  %v1303_v13 = vld [vmem:[#allocation2 + $0x58] sm:$0xff]  ;;  %v1304_v14 = vld [vmem:[#allocation2 + $0xa0] sm:$0xff] }
 0x2e9   : > { %1722 = vst [vmem:[%s2887_s11 + $0x108] sm:$0xff] %v1658_v46  ;;  %v1772_v26 = vpack.c.bf16 %v1664_v12, %v1663_v11  ;;  %v1771_v33 = vpack.c.bf16 %v1662_v23, %v1661_v22 }
 0x2ea   : > { %1801 = vst [vmem:[%s2889_s13 + $0x80] sm:$0xff] %v1769_v61  ;;  %v1617_v61 = vld [vmem:[#allocation8 + $0x1c0] sm:$0xff] }
 0x2eb   : > { %1719 = vst [vmem:[%s2887_s11 + $0xf0] sm:$0xff] %v1655_v57  ;;  %v1298_v57 = vld [vmem:[#allocation2 + $0x38] sm:$0xff] }
 0x2ec   : > { %1720 = vst [vmem:[%s2887_s11 + $0xf8] sm:$0xff] %v1656_v58  ;;  %v1450_v16 = vpop.permute.xlu1 %1449  ;;  %v1445_v17 = vpop.permute.xlu0 %1444  ;;  %v1295_v58 = vld [vmem:[#allocation2 + $0x68] sm:$0xff] }
 0x2ed   : > { %1800 = vst [vmem:[%s2889_s13 + $0x78] sm:$0xff] %v1768_v6  ;;  %v1541_v18 = vadd.f32 %v1450_v16, %v1285_v9  ;;  %v1542_v19 = vadd.f32 %v1450_v16, %v1286_v10  ;;  %v1539_v27 = vadd.f32 %v1445_v17, %v1283_v20  ;;  %v1540_v28 = vadd.f32 %v1445_v17, %v1284_v21  ;;  %v1302_v16 = vld [vmem:[#allocation2 + $0x10] sm:$0xff]  ;;  %v1621_v21 = vld [vmem:[#allocation8 + $0x1e0] sm:$0xff] }
 0x2ee   : > { %1747 = vst [vmem:[%s2887_s11 + $0x1d0] sm:$0xff] %v1683_v2  ;;  %v1623_v17 = vld [vmem:[#allocation8 + $0x1f0] sm:$0xff] }
 0x2ef   : > { %1748 = vst [vmem:[%s2887_s11 + $0x1d8] sm:$0xff] %v1684_v3  ;;  %v1669_v29 = vadd.f32 %v1605_v24, %v1541_v18  ;;  %v1670_v30 = vadd.f32 %v1606_v25, %v1542_v19  ;;  %v1667_v38 = vadd.f32 %v1603_v31, %v1539_v27  ;;  %v1668_v39 = vadd.f32 %v1604_v32, %v1540_v28  ;;  %v1615_v3 = vld [vmem:[#allocation8 + $0x1b0] sm:$0xff]  ;;  %v1624_v19 = vld [vmem:[#allocation8 + $0x1f8] sm:$0xff] }
 0x2f0   : > { %1814 = vst [vmem:[%s2889_s13 + $0xe8] sm:$0xff] %v1782_v15  ;;  %v1301_v15 = vld [vmem:[#allocation2 + $0x158] sm:$0xff] }
 0x2f1   : > { %1727 = vst [vmem:[%s2887_s11 + $0x130] sm:$0xff] %v1663_v11  ;;  %v1775_v44 = vpack.c.bf16 %v1670_v30, %v1669_v29  ;;  %v1774_v53 = vpack.c.bf16 %v1668_v39, %v1667_v38 }
 0x2f2   : > { %1728 = vst [vmem:[%s2887_s11 + $0x138] sm:$0xff] %v1664_v12 }
 0x2f3   : > { %1804 = vst [vmem:[%s2889_s13 + $0x98] sm:$0xff] %v1772_v26 }
 0x2f4   : > { %1725 = vst [vmem:[%s2887_s11 + $0x120] sm:$0xff] %v1661_v22  ;;  %v1465_v42 = vpop.permute.xlu1 %1464  ;;  %v1460_v43 = vpop.permute.xlu0 %1459  ;;  %v1622_v22 = vld [vmem:[#allocation8 + $0x1e8] sm:$0xff] }
 0x2f5   : > { %1726 = vst [vmem:[%s2887_s11 + $0x128] sm:$0xff] %v1662_v23  ;;  %v1547_v45 = vadd.f32 %v1465_v42, %v1291_v34  ;;  %v1548_v46 = vadd.f32 %v1465_v42, %v1292_v35  ;;  %v1545_v47 = vadd.f32 %v1460_v43, %v1289_v36  ;;  %v1546_v48 = vadd.f32 %v1460_v43, %v1290_v37 }
 0x2f6   : > { %1803 = vst [vmem:[%s2889_s13 + $0x90] sm:$0xff] %v1771_v33 }
 0x2f7   : > { %1733 = vst [vmem:[%s2887_s11 + $0x160] sm:$0xff] %v1669_v29  ;;  %v1675_v49 = vadd.f32 %v1611_v40, %v1547_v45  ;;  %v1676_v50 = vadd.f32 %v1612_v41, %v1548_v46  ;;  %v1673_v55 = vadd.f32 %v1609_v51, %v1545_v47  ;;  %v1674_v56 = vadd.f32 %v1610_v52, %v1546_v48 }
 0x2f8   : > { %1734 = vst [vmem:[%s2887_s11 + $0x168] sm:$0xff] %v1670_v30 }
 0x2f9   : > { %1807 = vst [vmem:[%s2889_s13 + $0xb0] sm:$0xff] %v1775_v44  ;;  %v1778_v60 = vpack.c.bf16 %v1676_v50, %v1675_v49  ;;  %v1777_v7 = vpack.c.bf16 %v1674_v56, %v1673_v55 }
 0x2fa   : > { %1731 = vst [vmem:[%s2887_s11 + $0x150] sm:$0xff] %v1667_v38 }
 0x2fb   : > { %1732 = vst [vmem:[%s2887_s11 + $0x158] sm:$0xff] %v1668_v39 }
 0x2fc   : > { %1806 = vst [vmem:[%s2889_s13 + $0xa8] sm:$0xff] %v1774_v53  ;;  %v1480_v63 = vpop.permute.xlu1 %1479  ;;  %v1475_v0 = vpop.permute.xlu0 %1474 }
 0x2fd   : > { %1739 = vst [vmem:[%s2887_s11 + $0x190] sm:$0xff] %v1675_v49  ;;  %v1553_v1 = vadd.f32 %v1480_v63, %v1297_v54  ;;  %v1554_v2 = vadd.f32 %v1480_v63, %v1298_v57  ;;  %v1551_v5 = vadd.f32 %v1475_v0, %v1295_v58  ;;  %v1552_v6 = vadd.f32 %v1475_v0, %v1296_v59 }
 0x2fe   : > { %1740 = vst [vmem:[%s2887_s11 + $0x198] sm:$0xff] %v1676_v50 }
 0x2ff   : > { %1810 = vst [vmem:[%s2889_s13 + $0xc8] sm:$0xff] %v1778_v60  ;;  %v1681_v8 = vadd.f32 %v1617_v61, %v1553_v1  ;;  %v1682_v9 = vadd.f32 %v1618_v62, %v1554_v2  ;;  %v1679_v10 = vadd.f32 %v1615_v3, %v1551_v5  ;;  %v1680_v11 = vadd.f32 %v1616_v4, %v1552_v6 }
 0x300   : > { %1737 = vst [vmem:[%s2887_s11 + $0x180] sm:$0xff] %v1673_v55 }
 0x301   : > { %1738 = vst [vmem:[%s2887_s11 + $0x188] sm:$0xff] %v1674_v56  ;;  %v1781_v12 = vpack.c.bf16 %v1682_v9, %v1681_v8  ;;  %v1780_v18 = vpack.c.bf16 %v1680_v11, %v1679_v10 }
 0x302   : > { %1809 = vst [vmem:[%s2889_s13 + $0xc0] sm:$0xff] %v1777_v7 }
 0x303   : > { %1745 = vst [vmem:[%s2887_s11 + $0x1c0] sm:$0xff] %v1681_v8 }
 0x304   : > { %1746 = vst [vmem:[%s2887_s11 + $0x1c8] sm:$0xff] %v1682_v9  ;;  %v1495_v20 = vpop.permute.xlu1 %1494  ;;  %v1490_v23 = vpop.permute.xlu0 %1489 }
 0x305   : > { %1813 = vst [vmem:[%s2889_s13 + $0xe0] sm:$0xff] %v1781_v12  ;;  %v1559_v24 = vadd.f32 %v1495_v20, %v1303_v13  ;;  %v1560_v25 = vadd.f32 %v1495_v20, %v1304_v14  ;;  %v1557_v26 = vadd.f32 %v1490_v23, %v1301_v15  ;;  %v1558_v27 = vadd.f32 %v1490_v23, %v1302_v16 }
 0x306   : > { %1743 = vst [vmem:[%s2887_s11 + $0x1b0] sm:$0xff] %v1679_v10 }
 0x307   : > { %1744 = vst [vmem:[%s2887_s11 + $0x1b8] sm:$0xff] %v1680_v11  ;;  %v1687_v28 = vadd.f32 %v1623_v17, %v1559_v24  ;;  %v1688_v29 = vadd.f32 %v1624_v19, %v1560_v25  ;;  %v1685_v30 = vadd.f32 %v1621_v21, %v1557_v26  ;;  %v1686_v31 = vadd.f32 %v1622_v22, %v1558_v27 }
 0x308   : > { %1812 = vst [vmem:[%s2889_s13 + $0xd8] sm:$0xff] %v1780_v18 }
 0x309   : > { %1751 = vst [vmem:[%s2887_s11 + $0x1f0] sm:$0xff] %v1687_v28  ;;  %v1784_v32 = vpack.c.bf16 %v1688_v29, %v1687_v28  ;;  %v1783_v33 = vpack.c.bf16 %v1686_v31, %v1685_v30 }
 0x30a   : > { %1752 = vst [vmem:[%s2887_s11 + $0x1f8] sm:$0xff] %v1688_v29 }
 0x30b   : > { %1816 = vst [vmem:[%s2889_s13 + $0xf8] sm:$0xff] %v1784_v32 }
 0x30c   : > { %1749 = vst [vmem:[%s2887_s11 + $0x1e0] sm:$0xff] %v1685_v30 }
 0x30d   : > { %1750 = vst [vmem:[%s2887_s11 + $0x1e8] sm:$0xff] %v1686_v31 }
 0x30e   : > { %1815 = vst [vmem:[%s2889_s13 + $0xf0] sm:$0xff] %v1783_v33 }
 0x30f PF: > { %s3407_s26 = sld [smem:[#allocation20_spill]]  ;;  %s1835_s30 = sshll.u32 %s2887_s11, 4  ;;  %s1836_s30 = int_to_ptr.vmem [resolvable:$true] %s1835_s30 }
 0x310   : > { %s3409_s4 = sld [smem:[#allocation30_spill]]  ;;  %s1818_s10 = scalar_lea.sflag [#allocation5], %s2883_s21 }
 0x315   : > { %s2198_s8 = sshll.u32 %s3407_s26, 9 }
 0x316   : > { %s1834_s0 = scalar_lea.hbm %s3409_s4, %s2198_s8  ;;  %s2470_s17 = scalar_lea.hbm %s3409_s4, 1024 }
 0x317   : > { %s1837_s12 = sshll.u32 %s1834_s0, 4  ;;  %s1838_s12 = int_to_ptr.hbm [resolvable:$true] %s1837_s12 }
 0x318   : > { %s2464_s14 = sshra.s32 %s1838_s12, 4  ;;  %s2465_s14 = int_to_ptr.hbm [resolvable:$true] %s2464_s14 }
 0x319   : > { %s2466_s15 = scalar_lea.hbm %s2465_s14, 512  ;;  %p2471_p12 = scmp.lt.s32.totalorder %s2465_s14, %s3409_s4 }
 0x31a   : > { %p2467_p4 = scmp.ne.s32.totalorder %s2465_s14, %s2466_s15  ;;  %p2472_p13 = scmp.lt.s32.totalorder %s2470_s17, %s2466_s15 }
 0x31c   : > { %p2468_p3 = pnand %p2467_p4, %p2764_p6  ;;  %p2473_p2 = por %p2472_p13, %p2471_p12 }
 0x31e   : > { %p2469_p9 = pneg %p2468_p3 }
 0x320   : > { %p2474_p7 = pnand %p2473_p2, %p2469_p9 }
 0x322   : > { %2477 = shalt.err (!%p2474_p7)
}
 0x323   : > { %s2645_s11 = smov 256   ;;  %s2646_s3 = smov 16  }
 0x324   : > { %2208 = dma.vmem_to_hbm [thread:$0]  (%p2764_p6), %s1836_s30, 8192, %s1838_s12, %s1818_s10, %s2645_s11, %s2645_s11, %s2646_s3  }
 0x325   : > { %s2199_s27 = sshll.u32 %s3407_s26, 8  ;;  %s1852_s8 = sshll.u32 %s2889_s13, 4  ;;  %s1853_s8 = int_to_ptr.vmem [resolvable:$true] %s1852_s8 }
 0x326   : > { %s3410_s0 = sld [smem:[#allocation31_spill]]  ;;  %s1823_s15 = scalar_lea.sflag [#allocation11], %s2883_s21 }
 0x32c   : > { %s1851_s7 = scalar_lea.hbm %s3410_s0, %s2199_s27  ;;  %s2498_s26 = scalar_lea.hbm %s3410_s0, 512 }
 0x32d   : > { %s1854_s14 = sshll.u32 %s1851_s7, 4  ;;  %s1855_s14 = int_to_ptr.hbm [resolvable:$true] %s1854_s14 }
 0x32e   : > { %s2492_s9 = sshra.s32 %s1855_s14, 4  ;;  %s2493_s9 = int_to_ptr.hbm [resolvable:$true] %s2492_s9 }
 0x32f   : > { %s2494_s17 = scalar_lea.hbm %s2493_s9, 256  ;;  %p2499_p11 = scmp.lt.s32.totalorder %s2493_s9, %s3410_s0 }
 0x330   : > { %p2495_p8 = scmp.ne.s32.totalorder %s2493_s9, %s2494_s17  ;;  %p2500_p0 = scmp.lt.s32.totalorder %s2498_s26, %s2494_s17 }
 0x332   : > { %p2496_p1 = pnand %p2495_p8, %p2764_p6  ;;  %p2501_p4 = por %p2500_p0, %p2499_p11 }
 0x334   : > { %p2497_p5 = pneg %p2496_p1 }
 0x336   : > { %p2502_p3 = pnand %p2501_p4, %p2497_p5 }
 0x338   : > { %2505 = shalt.err (!%p2502_p3)
}
 0x339   : > { %s2647_s21 = smov 128   ;;  %s2648_s12 = smov 8  }
 0x33a   : > { %2209 = dma.vmem_to_hbm [thread:$0]  (%p2764_p6), %s1853_s8, 4096, %s1855_s14, %s1823_s15, %s2647_s21, %s2647_s21, %s2648_s12  }
 0x33b PF: > { %s3411_s10 = sld [smem:[#allocation17_spill]]  ;;  %p2233_p9 = scmp.ge.s32.totalorder %s2636_s6, 2 }
 0x33d   : > { %p2224_p12 = pnand %p2233_p9, %p2770_p10 }
 0x33f   : > { %p2225_p13 = pneg %p2224_p12 }
 0x341   : > { %s1869_s3 = sand.u32 1, %s3411_s10  }
 0x342   : > { %s1870_s27 = scalar_lea.sflag [#allocation5], %s1869_s3 }
 0x343   : > { %2575 = dma.done.wait (%p2225_p13), %s1870_s27, 8192  }
 0x344   : > { %2577 = vsyncadd (%p2225_p13), %s1870_s27, 4294959104  ;;  %s1880_s5 = scalar_lea.sflag [#allocation11], %s1869_s3 }
 0x345   : > { %2579 = dma.done.wait (%p2225_p13), %s1880_s5, 4096  }
 0x346   : > { %2581 = vsyncadd (%p2225_p13), %s1880_s5, 4294963200  ;;  %s28_s6 = sadd.s32 1, %s2636_s6   ;;  %s3414_s8 = sld [smem:[#allocation18_spill]] }
 0x347   : > { %p3314_p2 = scmp.ge.s32.totalorder %s28_s6, 6   ;;  %s3415_s20 = sld [smem:[#allocation26_spill]] }
 0x348   : > { %s3416_s7 = sld [smem:[#allocation19_spill]]  ;;  %s3422_s18 = smov %s2588_s19 }
 0x349   : > { %s3417_s26 = sld [smem:[#allocation27_spill]]  ;;  %s3424_s21 = smov %s2600_s22 }
 0x34a   : > { %s3418_s14 = sld [smem:[#allocation21_spill]]  ;;  %s3425_s22 = smov %s2604_s23 }
 0x34b   : > { %s3419_s15 = sld [smem:[#allocation24_spill]]  ;;  %s3426_s23 = smov %s2849_s28 }
 0x34c   : > { %s3420_s30 = sld [smem:[#allocation25_spill]]  ;;  %s3423_s19 = smov %s3414_s8 }
 0x34d   : > { %s3427_s24 = smov %s2612_s25  ;;  %s3429_s27 = smov %s2628_s29 }
 0x34e   : > { %s3428_s25 = smov %s3416_s7  ;;  %27 = sbr.rel (!%p3314_p2) target bundleno = 19 (0x13), region = 123 }
 0x350   : > { %s3430_s28 = smov %s3418_s14 }
 0x351   : > { %s3431_s29 = smov %s3419_s15 }
 0x353   :  { %1886 = vsyncpa [#allocation4], 1 }
 0x354   :  { %1888 = vsyncpa [#allocation4 + $0x1], 1 }
 0x355   :  { %1889 = vsyncpa [#allocation7], 1 }
 0x356   :  { %1891 = vsyncpa [#allocation7 + $0x1], 1 }
 0x357   :  { %1892 = vsyncpa [#allocation5], 1 }
 0x358   :  { %1894 = vsyncpa [#allocation5 + $0x1], 1 }
 0x359   :  { %1895 = vsyncpa [#allocation11], 1 }
 0x35a   :  { %1897 = vsyncpa [#allocation11 + $0x1], 1 }

</bundles_post_ra>
